<compile_context>
chip_gen: v7x
topology: tpu7x:2x2x1
jax: 0.10.0
libtpu: 0.0.40
codegen_flags: <defaults>
</compile_context>

<pallas_src>
import functools

import jax
import jax.numpy as jnp
from jax.experimental import pallas as pl
from jax.experimental.pallas import tpu as pltpu


def _round_up(x, m):
    return ((x + m - 1) // m) * m


def _pick_tile(batch, max_tile):
    """Pick (tile_rows, n_tiles): big multiple-of-8 tiles, even count if split.

    An even tile count lets the "parallel" grid axis shard evenly across v7x's
    two TensorCores; harmless on single-core v5e/v6e.
    """
    b8 = _round_up(batch, 8)
    max_tile = max(8, (max_tile // 8) * 8)
    if b8 <= max_tile:
        return b8, 1
    tile = max_tile
    n = -(-b8 // tile)
    if n > 1 and n % 2:
        n += 1
        tile = _round_up(-(-b8 // n), 8)
        n = -(-b8 // tile)
    return tile, n


def cdlds_kernel(x_ref, cu_ref, wf_ref, wsh_ref, o_ref, *, num_subdyn,
                 control_size):
    """One batch tile of the CDLDS forward.

    x_ref  : (TB, d_in)     input rows in compute dtype (bf16 or f32)
    cu_ref : (TB, csh_pad)  f32 [relu(U)[:, idx].T | coeffs[:, idx].T | 0-pad]
    wf_ref : (K, d_in, dp)  per-subdyn F_i^T, zero-padded to dp lanes (resident)
    wsh_ref: (csh_pad, dp)  [K*B^T ; K*bias^T] (K-scale folded in on the host)
    o_ref  : (TB, dp)       lane-dense f32 output, dp = round_up(d_out, 128)
    """
    cdtype = wf_ref.dtype
    x = x_ref[...]
    cu = cu_ref[...]

    # Shared term, one small MXU push: K * (relu(U) @ B^T + c @ bias^T).
    acc = jnp.dot(cu.astype(cdtype), wsh_ref[...],
                  preferred_element_type=jnp.float32)

    # Per-subdyn terms: MXU matmul on the UNscaled x, exact f32 coefficient
    # scale on the VPU (dp-wide broadcast), f32 accumulate.  Static unroll —
    # num_subdyn is small and static.
    for i in range(num_subdyn):
        y = jnp.dot(x, wf_ref[i], preferred_element_type=jnp.float32)
        acc = acc + cu[:, control_size + i:control_size + i + 1] * y

    o_ref[...] = acc.astype(o_ref.dtype)


def prepare_weights(F_w, B_w, bias_w, *, compute_dtype=jnp.bfloat16):
    """Host-side, ONCE per parameter set: transpose / pad / fuse the weights.

    F_w   : (K, d_out, d_in)  torch Linear(input, output).weight per subdyn
    B_w   : (d_in, C)         torch Linear(control, input).weight
    bias_w: (d_in, K)         torch Linear(num_subdyn, input).weight
    Returns:
      wf  : (K, d_in, dp)          F_i^T zero-padded to dp = round_up(d_out,128)
      wsh : (round_up(C+K,8), dp)  [K*B^T ; K*bias^T]
    bf16 by default (bf16 MXU path + half the weight VMEM/DMA bytes); pass
    compute_dtype=jnp.float32 for exact f32 parity with the reference.
    """
    K, d_out, d_in = F_w.shape
    C = B_w.shape[1]
    assert d_out == d_in, "CDLDS forward requires input_size == output_size"
    assert bias_w.shape == (d_in, K)
    dp = _round_up(d_out, 128)
    csh_pad = _round_up(C + K, 8)

    wf = jnp.zeros((K, d_in, dp), jnp.float32)
    wf = wf.at[:, :, :d_out].set(
        jnp.transpose(F_w.astype(jnp.float32), (0, 2, 1)))
    # Shared block is added once per subdynamic in torch -> pre-scale by K.
    wsh = jnp.zeros((csh_pad, dp), jnp.float32)
    wsh = wsh.at[:C, :d_out].set(float(K) * B_w.T.astype(jnp.float32))
    wsh = wsh.at[C:C + K, :d_out].set(float(K) * bias_w.T.astype(jnp.float32))
    return wf.astype(compute_dtype), wsh.astype(compute_dtype)


@functools.partial(jax.jit, static_argnames=("tile_b",))
def cdlds_forward(x, idx, coeffs, U, wf, wsh, *, tile_b=512):
    """x: (B, d_in); idx: (B,) int32 time indices; wf/wsh from prepare_weights."""
    batch, d_in = x.shape
    K, d_in_w, dp = wf.shape
    assert d_in_w == d_in, "x width must match the prepared weights"
    C = U.shape[0]
    csh_pad = wsh.shape[0]
    d_out = d_in                      # enforced equal in prepare_weights
    cdtype = wf.dtype
    itsz = wf.dtype.itemsize

    # Tiny per-row gather glue (B x (C+K) values), fused by XLA under jit.
    # Coefficients stay f32 so the in-kernel scaling is exact.
    c = jnp.take(coeffs, idx, axis=1).T.astype(jnp.float32)                   # (B, K)
    u_eff = jnp.maximum(jnp.take(U, idx, axis=1).T, 0.0).astype(jnp.float32)  # (B, C)
    cu = jnp.concatenate([u_eff, c], axis=1)                                  # (B, C+K)

    # Batch tiling: big tiles on a "parallel" grid axis; even tile count when
    # the batch is split (v7x megacore).  One pad copy only when needed.
    tile, n_tiles = _pick_tile(batch, tile_b)
    b_pad = tile * n_tiles
    pad_rows = b_pad - batch
    pad_cols = csh_pad - (C + K)
    xk = x.astype(cdtype)
    if pad_rows or pad_cols:
        cu = jnp.pad(cu, ((0, pad_rows), (0, pad_cols)))
    if pad_rows:
        xk = jnp.pad(xk, ((0, pad_rows), (0, 0)))

    # Explicit VMEM budget (default scoped limit is only 16-32 MiB; v7x has
    # 64 MiB physical).  Single-buffer the resident weight once double
    # buffering it would actually cost real VMEM.
    wf_bytes = K * d_in * dp * itsz
    wsh_bytes = csh_pad * dp * itsz
    wf_single = wf_bytes > (8 << 20)
    wf_kwargs = dict(pipeline_mode=pl.Buffered(1)) if wf_single else {}
    needed = (2 * (tile * d_in * itsz)          # x tile, double buffered
              + 2 * (tile * csh_pad * 4)        # cu tile
              + 2 * (tile * dp * 4)             # out tile
              + (1 if wf_single else 2) * wf_bytes
              + 2 * wsh_bytes
              + 2 * (tile * dp * 4))            # acc / y intermediates
    vmem_limit = int(min(128 << 20, max(2 * needed + (2 << 20), 16 << 20)))

    out = pl.pallas_call(
        functools.partial(cdlds_kernel, num_subdyn=K, control_size=C),
        out_shape=jax.ShapeDtypeStruct((b_pad, dp), jnp.float32),
        grid=(n_tiles,),
        in_specs=[
            pl.BlockSpec((tile, d_in), lambda i: (i, 0)),
            pl.BlockSpec((tile, csh_pad), lambda i: (i, 0)),
            pl.BlockSpec((K, d_in, dp), lambda i: (0, 0, 0), **wf_kwargs),
            pl.BlockSpec((csh_pad, dp), lambda i: (0, 0)),
        ],
        out_specs=pl.BlockSpec((tile, dp), lambda i: (i, 0)),
        compiler_params=pltpu.CompilerParams(
            dimension_semantics=("parallel",),
            vmem_limit_bytes=vmem_limit),
    )(xk, cu, wf, wsh)

    # Lane-dense (dp-wide) store in the kernel; slice back to d_out outside.
    return out[:batch, :d_out].astype(x.dtype)


def ref_forward(x, idx, coeffs, F_w, B_w, bias_w, U):
    """Pure-JAX reference mirroring the PyTorch forward exactly (in f32)."""
    K = F_w.shape[0]
    c = jnp.take(coeffs, idx, axis=1).T                    # (B, K)
    u_eff = jnp.maximum(jnp.take(U, idx, axis=1).T, 0.0)   # (B, C)
    shared = u_eff @ B_w.T + c @ bias_w.T                  # (B, d_in)
    terms = [c[:, i:i + 1] * (x @ F_w[i].T) + shared for i in range(K)]
    return sum(terms)


if __name__ == "__main__":
    # Module-consistent sizes (input_size == output_size is required by the
    # PyTorch forward's broadcast).  The batch is chosen so the demo actually
    # exercises a multi-tile, even ("parallel") grid plus row padding.
    input_size = 32
    output_size = 32
    time_points = 16
    num_subdyn = 3
    control_size = 1
    batch = 1030          # -> 4 tiles of 264 rows (even count, 26 padded rows)

    key = jax.random.PRNGKey(0)
    k = jax.random.split(key, 7)

    coeffs = jax.random.uniform(k[0], (num_subdyn, time_points), jnp.float32)
    F_w = jax.random.normal(k[1], (num_subdyn, output_size, input_size),
                            jnp.float32) * 0.1
    B_w = jax.random.normal(k[2], (input_size, control_size), jnp.float32) * 0.1
    bias_w = jax.random.normal(k[3], (input_size, num_subdyn), jnp.float32) * 0.1
    U = jax.random.normal(k[4], (control_size, time_points), jnp.float32)
    x = jax.random.normal(k[5], (batch, input_size), jnp.float32)
    idx = jax.random.randint(k[6], (batch,), 0, time_points, jnp.int32)

    ref = ref_forward(x, idx, coeffs, F_w, B_w, bias_w, U)

    # f32 weight path: parity with the reference (tolerance allows for MXU
    # pass / accumulation-order differences vs XLA's matmuls).
    wf32, wsh32 = prepare_weights(F_w, B_w, bias_w, compute_dtype=jnp.float32)
    out_f32 = jax.block_until_ready(cdlds_forward(x, idx, coeffs, U, wf32, wsh32))
    assert out_f32.shape == (batch, output_size)
    assert jnp.allclose(out_f32, ref, atol=1e-3, rtol=1e-3), (
        "f32 path mismatch vs reference, max abs diff = "
        f"{float(jnp.max(jnp.abs(out_f32 - ref)))}")

    # Default bf16 MXU path: ~3x fewer MXU passes, half the x/weight DMA bytes;
    # accumulation stays f32, so error is bounded by bf16 input rounding.
    wfb, wshb = prepare_weights(F_w, B_w, bias_w)   # bf16 by default
    out_bf16 = jax.block_until_ready(cdlds_forward(x, idx, coeffs, U, wfb, wshb))
    assert out_bf16.shape == (batch, output_size)
    assert jnp.allclose(out_bf16, ref, atol=5e-2, rtol=5e-2), (
        "bf16 path mismatch vs reference, max abs diff = "
        f"{float(jnp.max(jnp.abs(out_bf16 - ref)))}")

    print("KERNEL_OK")
</pallas_src>

<mosaic_0001>
module attributes {stable_mosaic.version = 11 : i64} {
  func.func @cdlds_kernel(%arg0: i32, %arg1: memref<264x32xf32, #tpu.memory_space<vmem>>, %arg2: memref<264x8xf32, #tpu.memory_space<vmem>>, %arg3: memref<3x32x128xf32, #tpu.memory_space<vmem>>, %arg4: memref<8x128xf32, #tpu.memory_space<vmem>>, %arg5: memref<264x128xf32, #tpu.memory_space<vmem>>) attributes {dimension_semantics = [#tpu.dimension_semantics<parallel>], iteration_bounds = array<i64: 4>, scalar_prefetch = 0 : i64, scratch_operands = 0 : i64, tpu.core_type = #tpu.core_type<tc>, window_params = [{transform_indices = @transform_0, window_bounds = array<i64: 264, 32>}, {transform_indices = @transform_1, window_bounds = array<i64: 264, 8>}, {pipeline_mode = #tpu.pipeline_mode<synchronous>, transform_indices = @transform_2, window_bounds = array<i64: 3, 32, 128>}, {pipeline_mode = #tpu.pipeline_mode<synchronous>, transform_indices = @transform_3, window_bounds = array<i64: 8, 128>}, {transform_indices = @transform_4, window_bounds = array<i64: 264, 128>}]} {
    %c0 = arith.constant 0 : index
    %c0_0 = arith.constant 0 : index
    %0 = vector.load %arg1[%c0, %c0_0] : memref<264x32xf32, #tpu.memory_space<vmem>>, vector<264x32xf32>
    %c0_1 = arith.constant 0 : index
    %c0_2 = arith.constant 0 : index
    %1 = vector.load %arg2[%c0_1, %c0_2] : memref<264x8xf32, #tpu.memory_space<vmem>>, vector<264x8xf32>
    %c0_3 = arith.constant 0 : index
    %c0_4 = arith.constant 0 : index
    %2 = vector.load %arg4[%c0_3, %c0_4] : memref<8x128xf32, #tpu.memory_space<vmem>>, vector<8x128xf32>
    %cst = arith.constant dense<0.000000e+00> : vector<264x128xf32>
    %3 = tpu.matmul %1, %2, %cst {dimension_numbers = #tpu.dot_dimension_numbers<[1], [0], [0], [1], [0, 0, 1, 1], [], []>} : vector<264x8xf32>, vector<8x128xf32>, vector<264x128xf32> -> vector<264x128xf32>
    %c0_5 = arith.constant 0 : index
    %c0_6 = arith.constant 0 : index
    %c0_7 = arith.constant 0 : index
    %4 = vector.load %arg3[%c0_5, %c0_6, %c0_7] : memref<3x32x128xf32, #tpu.memory_space<vmem>>, vector<1x32x128xf32>
    %5 = vector.shape_cast %4 : vector<1x32x128xf32> to vector<32x128xf32>
    %cst_8 = arith.constant dense<0.000000e+00> : vector<264x128xf32>
    %6 = tpu.matmul %0, %5, %cst_8 {dimension_numbers = #tpu.dot_dimension_numbers<[1], [0], [0], [1], [0, 0, 1, 1], [], []>} : vector<264x32xf32>, vector<32x128xf32>, vector<264x128xf32> -> vector<264x128xf32>
    %7 = vector.extract_strided_slice %1 {offsets = [0, 1], sizes = [264, 1], strides = [1, 1]} : vector<264x8xf32> to vector<264x1xf32>
    %8 = vector.broadcast %7 : vector<264x1xf32> to vector<264x128xf32>
    %9 = arith.mulf %8, %6 : vector<264x128xf32>
    %10 = arith.addf %3, %9 : vector<264x128xf32>
    %c1 = arith.constant 1 : index
    %c0_9 = arith.constant 0 : index
    %c0_10 = arith.constant 0 : index
    %11 = vector.load %arg3[%c1, %c0_9, %c0_10] : memref<3x32x128xf32, #tpu.memory_space<vmem>>, vector<1x32x128xf32>
    %12 = vector.shape_cast %11 : vector<1x32x128xf32> to vector<32x128xf32>
    %cst_11 = arith.constant dense<0.000000e+00> : vector<264x128xf32>
    %13 = tpu.matmul %0, %12, %cst_11 {dimension_numbers = #tpu.dot_dimension_numbers<[1], [0], [0], [1], [0, 0, 1, 1], [], []>} : vector<264x32xf32>, vector<32x128xf32>, vector<264x128xf32> -> vector<264x128xf32>
    %14 = vector.extract_strided_slice %1 {offsets = [0, 2], sizes = [264, 1], strides = [1, 1]} : vector<264x8xf32> to vector<264x1xf32>
    %15 = vector.broadcast %14 : vector<264x1xf32> to vector<264x128xf32>
    %16 = arith.mulf %15, %13 : vector<264x128xf32>
    %17 = arith.addf %10, %16 : vector<264x128xf32>
    %c2 = arith.constant 2 : index
    %c0_12 = arith.constant 0 : index
    %c0_13 = arith.constant 0 : index
    %18 = vector.load %arg3[%c2, %c0_12, %c0_13] : memref<3x32x128xf32, #tpu.memory_space<vmem>>, vector<1x32x128xf32>
    %19 = vector.shape_cast %18 : vector<1x32x128xf32> to vector<32x128xf32>
    %cst_14 = arith.constant dense<0.000000e+00> : vector<264x128xf32>
    %20 = tpu.matmul %0, %19, %cst_14 {dimension_numbers = #tpu.dot_dimension_numbers<[1], [0], [0], [1], [0, 0, 1, 1], [], []>} : vector<264x32xf32>, vector<32x128xf32>, vector<264x128xf32> -> vector<264x128xf32>
    %21 = vector.extract_strided_slice %1 {offsets = [0, 3], sizes = [264, 1], strides = [1, 1]} : vector<264x8xf32> to vector<264x1xf32>
    %22 = vector.broadcast %21 : vector<264x1xf32> to vector<264x128xf32>
    %23 = arith.mulf %22, %20 : vector<264x128xf32>
    %24 = arith.addf %17, %23 : vector<264x128xf32>
    %c0_15 = arith.constant 0 : index
    %c0_16 = arith.constant 0 : index
    %25 = vector.load %arg5[%c0_15, %c0_16] : memref<264x128xf32, #tpu.memory_space<vmem>>, vector<264x128xf32>
    tpu.vector_store %arg5[%c0_15, %c0_16], %24 {strides = array<i32>} : memref<264x128xf32, #tpu.memory_space<vmem>>, vector<264x128xf32>,
    return
  }
  func.func @transform_0(%arg0: i32) -> (i32, i32) {
    %c0_i32 = arith.constant 0 : i32
    %c0_i32_0 = arith.constant 0 : i32
    return %arg0, %c0_i32 : i32, i32
  }
  func.func @transform_1(%arg0: i32) -> (i32, i32) {
    %c0_i32 = arith.constant 0 : i32
    %c0_i32_0 = arith.constant 0 : i32
    return %arg0, %c0_i32 : i32, i32
  }
  func.func @transform_2(%arg0: i32) -> (i32, i32, i32) {
    %c0_i32 = arith.constant 0 : i32
    %c0_i32_0 = arith.constant 0 : i32
    %c0_i32_1 = arith.constant 0 : i32
    %c0_i32_2 = arith.constant 0 : i32
    return %c0_i32, %c0_i32_0, %c0_i32_1 : i32, i32, i32
  }
  func.func @transform_3(%arg0: i32) -> (i32, i32) {
    %c0_i32 = arith.constant 0 : i32
    %c0_i32_0 = arith.constant 0 : i32
    %c0_i32_1 = arith.constant 0 : i32
    return %c0_i32, %c0_i32_0 : i32, i32
  }
  func.func @transform_4(%arg0: i32) -> (i32, i32) {
    %c0_i32 = arith.constant 0 : i32
    %c0_i32_0 = arith.constant 0 : i32
    return %arg0, %c0_i32 : i32, i32
  }
}

</mosaic_0001>

<bundles_post_ra>
// kernel: cdlds_forward.1
= control target key start
LH: loop header
LB: loop body
LE: loop exit
PB: predicated region body
PF: predicated region fallthrough
CT: control target
= control target key end

     0   :  { %s2880_s15 = smov 0   ;;  %s4106_s0 = inlined_call_operand.vmem [shape: f32[1056,32], index: 0, kind: input, shape index: {}]   ;;  %s4107_s1 = inlined_call_operand.vmem [shape: f32[1056,8], index: 1, kind: input, shape index: {}]   ;;  %s4108_s2 = inlined_call_operand.vmem [shape: f32[3,32,128], index: 2, kind: input, shape index: {}]   ;;  %s4109_s3 = inlined_call_operand.vmem [shape: f32[8,128], index: 3, kind: input, shape index: {}]   ;;  %s4110_s4 = inlined_call_operand.vmem [shape: f32[1056,128], index: 4, kind: output, shape index: {}]  }
   0x1 LB: > { %s2086_s16 = sadd.s32 4294967295, %s2847_s15   ;;  %p2090_p0 = scmp.ge.s32.totalorder %s2847_s15, 1  ;;  %s2847_s15 = sphi %s2880_s15, %s14_s15  }
   0x2   : > { %p174_p1 = scmp.lt.s32.totalorder %s2847_s15, 5 }
   0x4   : > { %p175_p2 = pnand %p2090_p0, %p174_p1 }
   0x6   : > { %178 = sbr.rel (%p175_p2) target bundleno = 500 (0x1f4), region = 36 }
   0xd   : > { %v290_v0 = vld [vmem:[%s4108_s2] sm:$0xff]  ;;  %v291_v1 = vld [vmem:[%s4108_s2 + $0x8] sm:$0xff]  ;;  %v292_v2 = vld [vmem:[%s4108_s2 + $0x10] sm:$0xff]  ;;  %v2849_v3 = vmov 0.0|0.0   ;;  %v2850_v5 = vmov 0.0   ;;  %s205_s27 = smul.u32 33, %s2086_s16 }
   0xe   : > { %2803 = vmatprep.subr.bf16.mxu0 %v2849_v3  ;;  %v2804_v4 = vpack.c.bf16 %v291_v1, %v290_v0  ;;  %2488 = vmatprep.subr.mxu1 %v2850_v5  ;;  %v293_v6 = vld [vmem:[%s4108_s2 + $0x18] sm:$0xff]  ;;  %v289_v7 = vld [vmem:[%s4109_s3] sm:$0xff]  ;;  %vm2851_vm0 = vmmov 0   ;;  %v2161_v10 = vld [vmem:[%s4108_s2 + $0x28] sm:$0xff]  ;;  %v2852_v13 = vmov 1   ;;  %vm822_vm1 = vcmask 64512  }
   0xf   : > { %2489 = vmatpush3.msra.mxu1 %v289_v7  ;;  %2490 = vmatprep.mubr.msk.f32.mxu1 %vm2851_vm0, %v2850_v5  ;;  %v2807_v8 = vpack.c.bf16 %v293_v6, %v292_v2  ;;  %p206_p3 = scmp.lt.s32.totalorder %s205_s27, 131  ;;  %v2160_v9 = vld [vmem:[%s4108_s2 + $0x20] sm:$0xff]  ;;  %v2198_v12 = vld [vmem:[%s4108_s2 + $0x48] sm:$0xff]  ;;  %vm294_vm2 = vcmask 261120   ;;  %v2162_v16 = vld [vmem:[%s4108_s2 + $0x30] sm:$0xff] }
  0x10   : > { %2805 = vmatpush3.bf16.msra.mxu0 %v2804_v4  ;;  %2809 = vmatprep.subr.bf16.mxu1 %v2849_v3  ;;  %v2197_v11 = vld [vmem:[%s4108_s2 + $0x40] sm:$0xff]  ;;  %v2810_v14 = vpack.c.bf16 %v2161_v10, %v2160_v9  ;;  %v2163_v17 = vld [vmem:[%s4108_s2 + $0x38] sm:$0xff]  ;;  %v2199_v18 = vld [vmem:[%s4108_s2 + $0x50] sm:$0xff] }
  0x11   : > { %2806 = vmatprep.subr.bf16.mxu0 %v2849_v3  ;;  %2389 = vmatprep.mubr.msk.f32.mxu0 %vm2851_vm0, %v2850_v5  ;;  %s4182_s27 = smov (!%p206_p3, %s205_s27), 131  ;;  %v2816_v15 = vpack.c.bf16 %v2198_v12, %v2197_v11  ;;  %v2200_v21 = vld [vmem:[%s4108_s2 + $0x58] sm:$0xff]  ;;  %v2813_v24 = vpack.c.bf16 %v2163_v17, %v2162_v16  ;;  %v2853_v11 = vmov 2  }
  0x12   : > { %2836 = vset.pattern.permute.xlu1 %v2852_v13  ;;  %2835 = vset.pattern.permute.xlu0 %v2852_v13  ;;  %s2920_s10 = sshll.u32 %s4182_s27, 3  ;;  %v2819_v25 = vpack.c.bf16 %v2200_v21, %v2199_v18 }
  0x13   : > { %s2926_s13 = scalar_lea.vmem %s4107_s1, %s2920_s10  ;;  %s2932_s17 = scalar_lea.vmem %s4106_s0, %s2920_s10 }
  0x14   : > { %2808 = vmatpush3.bf16.msra.mxu0 %v2807_v8  ;;  %v2944_v19 = vld [vmem:[%s2926_s13] sm:$0xff]  ;;  %v2957_v22 = vld [vmem:[%s2926_s13 + $0x8] sm:$0xff]  ;;  %v2975_v26 = vld [vmem:[%s2926_s13 + $0x10] sm:$0xff]  ;;  %s4004_s28 = scalar_lea.vmem %s4110_s4, %s2920_s10 }
  0x15   : > { %2815 = vmatprep.subr.bf16.mxu0 %v2849_v3  ;;  %v2947_v20 = vld [vmem:[%s2932_s17] sm:$0xff]  ;;  %2491 = vmatmul.mubr.msk.f32.vlgmr.msra.gmra.mrb[0].mxu1 %vm822_vm1, %v2944_v19  ;;  %v2960_v23 = vld [vmem:[%s2932_s17 + $0x8] sm:$0xff]  ;;  %v2978_v27 = vld [vmem:[%s2932_s17 + $0x10] sm:$0xff] }
  0x16   : > { %2811 = vmatpush3.bf16.msra.mxu1 %v2810_v14  ;;  %2493 = vmatprep.mubr.msk.f32.mxu1 %vm2851_vm0, %v2850_v5  ;;  %v2991_v28 = vld [vmem:[%s2926_s13 + $0x18] sm:$0xff]  ;;  %v3007_v30 = vld [vmem:[%s2926_s13 + $0x20] sm:$0xff]  ;;  %v3013_v32 = vld [vmem:[%s2926_s13 + $0x28] sm:$0xff] }
  0x17   : > { %2390 = vmatmul.mubr.msk.f32.vlgmr.msra.gmra.mrb[0].mxu0 %vm294_vm2, %v2947_v20  ;;  %2812 = vmatprep.subr.bf16.mxu1 %v2849_v3  ;;  %v2994_v29 = vld [vmem:[%s2932_s17 + $0x18] sm:$0xff]  ;;  %v3010_v31 = vld [vmem:[%s2932_s17 + $0x20] sm:$0xff]  ;;  %v3026_v33 = vld [vmem:[%s2932_s17 + $0x28] sm:$0xff] }
  0x18   : > { %2817 = vmatpush3.bf16.msra.mxu0 %v2816_v15  ;;  %2392 = vmatprep.mubr.msk.f32.mxu0 %vm2851_vm0, %v2850_v5  ;;  %v3029_v34 = vld [vmem:[%s2926_s13 + $0x30] sm:$0xff]  ;;  %v3032_v35 = vld [vmem:[%s2926_s13 + $0x38] sm:$0xff]  ;;  %v3048_v37 = vld [vmem:[%s2926_s13 + $0x40] sm:$0xff] }
  0x19   : > { %2818 = vmatprep.subr.bf16.mxu0 %v2849_v3  ;;  %2494 = vmatmul.mubr.msk.f32.gmra.mrb[2].mxu1 %vm822_vm1, %v2957_v22  ;;  %v3045_v36 = vld [vmem:[%s2932_s17 + $0x30] sm:$0xff]  ;;  %v3051_v38 = vld [vmem:[%s2926_s13 + $0x48] sm:$0xff]  ;;  %v3064_v39 = vld [vmem:[%s2932_s17 + $0x38] sm:$0xff] }
  0x1a   : > { %2496 = vmatprep.mubr.msk.f32.mxu1 %vm2851_vm0, %v2850_v5  ;;  %2814 = vmatpush3.bf16.msra.mxu1 %v2813_v24  ;;  %v3067_v40 = vld [vmem:[%s2926_s13 + $0x50] sm:$0xff]  ;;  %v3070_v41 = vld [vmem:[%s2926_s13 + $0x58] sm:$0xff]  ;;  %v3083_v42 = vld [vmem:[%s2932_s17 + $0x40] sm:$0xff] }
  0x1b   : > { %2393 = vmatmul.mubr.msk.f32.gmra.mrb[2].mxu0 %vm294_vm2, %v2960_v23  ;;  %636 = vperm.xlu1 %2836, %v2975_v26   ;;  %v3086_v43 = vld [vmem:[%s2926_s13 + $0x60] sm:$0xff]  ;;  %v3089_v44 = vld [vmem:[%s2926_s13 + $0x68] sm:$0xff]  ;;  %v3105_v46 = vld [vmem:[%s2926_s13 + $0x70] sm:$0xff] }
  0x1c   : > { %2395 = vmatprep.mubr.msk.f32.mxu0 %vm2851_vm0, %v2850_v5  ;;  %2820 = vmatpush3.bf16.msra.mxu0 %v2819_v25  ;;  %v3102_v45 = vld [vmem:[%s2932_s17 + $0x48] sm:$0xff]  ;;  %v3108_v47 = vld [vmem:[%s2926_s13 + $0x78] sm:$0xff]  ;;  %v3121_v48 = vld [vmem:[%s2932_s17 + $0x50] sm:$0xff] }
  0x1d   : > { %626 = vperm.xlu0 %2835, %v2944_v19   ;;  %2497 = vmatmul.mubr.msk.f32.gmra.mrb[4].mxu1 %vm822_vm1, %v2975_v26  ;;  %v3124_v49 = vld [vmem:[%s2926_s13 + $0x80] sm:$0xff]  ;;  %v3127_v50 = vld [vmem:[%s2926_s13 + $0x88] sm:$0xff]  ;;  %v3140_v51 = vld [vmem:[%s2932_s17 + $0x58] sm:$0xff] }
  0x1e   : > { %2499 = vmatprep.mubr.msk.f32.mxu1 %vm2851_vm0, %v2850_v5  ;;  %v3143_v52 = vld [vmem:[%s2926_s13 + $0x90] sm:$0xff]  ;;  %v3146_v53 = vld [vmem:[%s2926_s13 + $0x98] sm:$0xff]  ;;  %v3159_v54 = vld [vmem:[%s2932_s17 + $0x60] sm:$0xff] }
  0x1f   : > { %2396 = vmatmul.mubr.msk.f32.gmra.mrb[4].mxu0 %vm294_vm2, %v2978_v27  ;;  %641 = vperm.xlu1 %2836, %v2991_v28   ;;  %v3162_v55 = vld [vmem:[%s2926_s13 + $0xa0] sm:$0xff]  ;;  %v3165_v56 = vld [vmem:[%s2926_s13 + $0xa8] sm:$0xff]  ;;  %v3181_v58 = vld [vmem:[%s2926_s13 + $0xb0] sm:$0xff] }
  0x20   : > { %2398 = vmatprep.mubr.msk.f32.mxu0 %vm2851_vm0, %v2850_v5  ;;  %v3178_v57 = vld [vmem:[%s2932_s17 + $0x68] sm:$0xff]  ;;  %v3184_v59 = vld [vmem:[%s2926_s13 + $0xb8] sm:$0xff]  ;;  %v3197_v60 = vld [vmem:[%s2932_s17 + $0x70] sm:$0xff] }
  0x21   : > { %631 = vperm.xlu0 %2835, %v2957_v22   ;;  %2500 = vmatmul.mubr.msk.f32.gmra.mrb[6].mxu1 %vm822_vm1, %v2991_v28  ;;  %v3200_v61 = vld [vmem:[%s2926_s13 + $0xc0] sm:$0xff]  ;;  %v3203_v62 = vld [vmem:[%s2926_s13 + $0xc8] sm:$0xff]  ;;  %v3216_v63 = vld [vmem:[%s2932_s17 + $0x78] sm:$0xff] }
  0x22   : > { %2502 = vmatprep.mubr.msk.f32.mxu1 %vm2851_vm0, %v2850_v5  ;;  %v3219_v0 = vld [vmem:[%s2926_s13 + $0xd0] sm:$0xff]  ;;  %v3222_v1 = vld [vmem:[%s2926_s13 + $0xd8] sm:$0xff]  ;;  %v3235_v2 = vld [vmem:[%s2932_s17 + $0x80] sm:$0xff] }
  0x23   : > { %2399 = vmatmul.mubr.msk.f32.gmra.mrb[6].mxu0 %vm294_vm2, %v2994_v29  ;;  %651 = vperm.xlu1 %2836, %v3013_v32   ;;  %v3238_v3 = vld [vmem:[%s2926_s13 + $0xe0] sm:$0xff]  ;;  %v3241_v4 = vld [vmem:[%s2926_s13 + $0xe8] sm:$0xff]  ;;  %v3257_v7 = vld [vmem:[%s2926_s13 + $0xf0] sm:$0xff] }
  0x24   : > { %2401 = vmatprep.mubr.msk.f32.mxu0 %vm2851_vm0, %v2850_v5  ;;  %v3254_v6 = vld [vmem:[%s2932_s17 + $0x88] sm:$0xff]  ;;  %v3260_v8 = vld [vmem:[%s2926_s13 + $0xf8] sm:$0xff]  ;;  %v3273_v9 = vld [vmem:[%s2932_s17 + $0x90] sm:$0xff] }
  0x25   : > { %646 = vperm.xlu0 %2835, %v3007_v30   ;;  %2503 = vmatmul.mubr.msk.f32.gmra.mrb[8].mxu1 %vm822_vm1, %v3007_v30  ;;  %v3276_v10 = vld [vmem:[%s2926_s13 + $0x100] sm:$0xff]  ;;  %v3288_v12 = vld [vmem:[%s2932_s17 + $0x98] sm:$0xff]  ;;  %v3313_v14 = vld [vmem:[%s2932_s17 + $0xa8] sm:$0xff] }
  0x26   : > { %2505 = vmatprep.mubr.msk.f32.mxu1 %vm2851_vm0, %v2850_v5  ;;  %v3300_v13 = vld [vmem:[%s2932_s17 + $0xa0] sm:$0xff]  ;;  %v3326_v15 = vld [vmem:[%s2932_s17 + $0xb0] sm:$0xff]  ;;  %v3339_v16 = vld [vmem:[%s2932_s17 + $0xb8] sm:$0xff] }
  0x27   : > { %2402 = vmatmul.mubr.msk.f32.gmra.mrb[8].mxu0 %vm294_vm2, %v3010_v31  ;;  %661 = vperm.xlu1 %2836, %v3032_v35   ;;  %v3352_v17 = vld [vmem:[%s2932_s17 + $0xc0] sm:$0xff]  ;;  %v3365_v18 = vld [vmem:[%s2932_s17 + $0xc8] sm:$0xff]  ;;  %v3378_v21 = vld [vmem:[%s2932_s17 + $0xd0] sm:$0xff] }
  0x28   : > { %2404 = vmatprep.mubr.msk.f32.mxu0 %vm2851_vm0, %v2850_v5  ;;  %4127 = vst [vmem:[#allocation2_spill] sm:$0xff] %v3365_v18  ;;  %4128 = vst [vmem:[#allocation3_spill] sm:$0xff] %v3378_v21  ;;  %v3391_v24 = vld [vmem:[%s2932_s17 + $0xd8] sm:$0xff]  ;;  %v3404_v25 = vld [vmem:[%s2932_s17 + $0xe0] sm:$0xff] }
  0x29   : > { %656 = vperm.xlu0 %2835, %v3029_v34   ;;  %2506 = vmatmul.mubr.msk.f32.gmra.mrb[10].mxu1 %vm822_vm1, %v3013_v32  ;;  %4129 = vst [vmem:[#allocation4_spill] sm:$0xff] %v3391_v24  ;;  %4130 = vst [vmem:[#allocation5_spill] sm:$0xff] %v3404_v25 }
  0x2a   : > { %2508 = vmatprep.mubr.msk.f32.mxu1 %vm2851_vm0, %v2850_v5 }
  0x2b   : > { %2405 = vmatmul.mubr.msk.f32.gmra.mrb[10].mxu0 %vm294_vm2, %v3026_v33  ;;  %671 = vperm.xlu1 %2836, %v3051_v38  }
  0x2c   : > { %2407 = vmatprep.mubr.msk.f32.mxu0 %vm2851_vm0, %v2850_v5 }
  0x2d   : > { %666 = vperm.xlu0 %2835, %v3048_v37   ;;  %2509 = vmatmul.mubr.msk.f32.gmra.mrb[12].mxu1 %vm822_vm1, %v3029_v34 }
  0x2e   : > { %2511 = vmatprep.mubr.msk.f32.mxu1 %vm2851_vm0, %v2850_v5 }
  0x2f   : > { %2408 = vmatmul.mubr.msk.f32.gmra.mrb[12].mxu0 %vm294_vm2, %v3045_v36  ;;  %681 = vperm.xlu1 %2836, %v3070_v41  }
  0x30   : > { %2410 = vmatprep.mubr.msk.f32.mxu0 %vm2851_vm0, %v2850_v5 }
  0x31   : > { %676 = vperm.xlu0 %2835, %v3067_v40   ;;  %2512 = vmatmul.mubr.msk.f32.gmra.mrb[14].mxu1 %vm822_vm1, %v3032_v35 }
  0x32   : > { %2514 = vmatprep.mubr.msk.f32.mxu1 %vm2851_vm0, %v2850_v5 }
  0x33   : > { %2411 = vmatmul.mubr.msk.f32.gmra.mrb[14].mxu0 %vm294_vm2, %v3064_v39  ;;  %691 = vperm.xlu1 %2836, %v3089_v44  }
  0x34   : > { %2413 = vmatprep.mubr.msk.f32.mxu0 %vm2851_vm0, %v2850_v5 }
  0x35   : > { %686 = vperm.xlu0 %2835, %v3086_v43   ;;  %2515 = vmatmul.mubr.msk.f32.gmra.mrb[16].mxu1 %vm822_vm1, %v3048_v37 }
  0x36   : > { %2517 = vmatprep.mubr.msk.f32.mxu1 %vm2851_vm0, %v2850_v5 }
  0x37   : > { %2414 = vmatmul.mubr.msk.f32.gmra.mrb[16].mxu0 %vm294_vm2, %v3083_v42  ;;  %701 = vperm.xlu1 %2836, %v3108_v47  }
  0x38   : > { %2416 = vmatprep.mubr.msk.f32.mxu0 %vm2851_vm0, %v2850_v5 }
  0x39   : > { %696 = vperm.xlu0 %2835, %v3105_v46   ;;  %2518 = vmatmul.mubr.msk.f32.gmra.mrb[18].mxu1 %vm822_vm1, %v3051_v38 }
  0x3a   : > { %2520 = vmatprep.mubr.msk.f32.mxu1 %vm2851_vm0, %v2850_v5 }
  0x3b   : > { %2417 = vmatmul.mubr.msk.f32.gmra.mrb[18].mxu0 %vm294_vm2, %v3102_v45  ;;  %711 = vperm.xlu1 %2836, %v3127_v50  }
  0x3c   : > { %2419 = vmatprep.mubr.msk.f32.mxu0 %vm2851_vm0, %v2850_v5 }
  0x3d   : > { %706 = vperm.xlu0 %2835, %v3124_v49   ;;  %2521 = vmatmul.mubr.msk.f32.gmra.mrb[20].mxu1 %vm822_vm1, %v3067_v40 }
  0x3e   : > { %2523 = vmatprep.mubr.msk.f32.mxu1 %vm2851_vm0, %v2850_v5 }
  0x3f   : > { %2420 = vmatmul.mubr.msk.f32.gmra.mrb[20].mxu0 %vm294_vm2, %v3121_v48  ;;  %721 = vperm.xlu1 %2836, %v3146_v53  }
  0x40   : > { %2422 = vmatprep.mubr.msk.f32.mxu0 %vm2851_vm0, %v2850_v5 }
  0x41   : > { %716 = vperm.xlu0 %2835, %v3143_v52   ;;  %2524 = vmatmul.mubr.msk.f32.gmra.mrb[22].mxu1 %vm822_vm1, %v3070_v41 }
  0x42   : > { %2526 = vmatprep.mubr.msk.f32.mxu1 %vm2851_vm0, %v2850_v5 }
  0x43   : > { %2423 = vmatmul.mubr.msk.f32.gmra.mrb[22].mxu0 %vm294_vm2, %v3140_v51  ;;  %731 = vperm.xlu1 %2836, %v3165_v56  }
  0x44   : > { %2425 = vmatprep.mubr.msk.f32.mxu0 %vm2851_vm0, %v2850_v5 }
  0x45   : > { %726 = vperm.xlu0 %2835, %v3162_v55   ;;  %2527 = vmatmul.mubr.msk.f32.gmra.mrb[24].mxu1 %vm822_vm1, %v3086_v43 }
  0x46   : > { %2529 = vmatprep.mubr.msk.f32.mxu1 %vm2851_vm0, %v2850_v5 }
  0x47   : > { %2426 = vmatmul.mubr.msk.f32.gmra.mrb[24].mxu0 %vm294_vm2, %v3159_v54  ;;  %741 = vperm.xlu1 %2836, %v3184_v59  }
  0x48   : > { %2428 = vmatprep.mubr.msk.f32.mxu0 %vm2851_vm0, %v2850_v5 }
  0x49   : > { %736 = vperm.xlu0 %2835, %v3181_v58   ;;  %2530 = vmatmul.mubr.msk.f32.gmra.mrb[26].mxu1 %vm822_vm1, %v3089_v44 }
  0x4a   : > { %2532 = vmatprep.mubr.msk.f32.mxu1 %vm2851_vm0, %v2850_v5 }
  0x4b   : > { %2429 = vmatmul.mubr.msk.f32.gmra.mrb[26].mxu0 %vm294_vm2, %v3178_v57  ;;  %751 = vperm.xlu1 %2836, %v3203_v62  }
  0x4c   : > { %2431 = vmatprep.mubr.msk.f32.mxu0 %vm2851_vm0, %v2850_v5 }
  0x4d   : > { %746 = vperm.xlu0 %2835, %v3200_v61   ;;  %2533 = vmatmul.mubr.msk.f32.gmra.mrb[28].mxu1 %vm822_vm1, %v3105_v46 }
  0x4e   : > { %2535 = vmatprep.mubr.msk.f32.mxu1 %vm2851_vm0, %v2850_v5 }
  0x4f   : > { %2432 = vmatmul.mubr.msk.f32.gmra.mrb[28].mxu0 %vm294_vm2, %v3197_v60  ;;  %761 = vperm.xlu1 %2836, %v3222_v1  }
  0x50   : > { %2434 = vmatprep.mubr.msk.f32.mxu0 %vm2851_vm0, %v2850_v5 }
  0x51   : > { %756 = vperm.xlu0 %2835, %v3219_v0   ;;  %2536 = vmatmul.mubr.msk.f32.gmra.mrb[30].mxu1 %vm822_vm1, %v3108_v47 }
  0x52   : > { %2538 = vmatprep.mubr.msk.f32.mxu1 %vm2851_vm0, %v2850_v5 }
  0x53   : > { %2435 = vmatmul.mubr.msk.f32.gmra.mrb[30].mxu0 %vm294_vm2, %v3216_v63  ;;  %771 = vperm.xlu1 %2836, %v3241_v4  }
  0x54   : > { %2437 = vmatprep.mubr.msk.f32.mxu0 %vm2851_vm0, %v2850_v5 }
  0x55   : > { %766 = vperm.xlu0 %2835, %v3238_v3   ;;  %2539 = vmatmul.mubr.msk.f32.gmra.mrb[32].mxu1 %vm822_vm1, %v3124_v49 }
  0x56   : > { %2541 = vmatprep.mubr.msk.f32.mxu1 %vm2851_vm0, %v2850_v5 }
  0x57   : > { %2438 = vmatmul.mubr.msk.f32.gmra.mrb[32].mxu0 %vm294_vm2, %v3235_v2  ;;  %781 = vperm.xlu1 %2836, %v3260_v8  }
  0x58   : > { %2440 = vmatprep.mubr.msk.f32.mxu0 %vm2851_vm0, %v2850_v5 }
  0x59   : > { %776 = vperm.xlu0 %2835, %v3257_v7   ;;  %2542 = vmatmul.mubr.msk.f32.gmra.mrb[34].mxu1 %vm822_vm1, %v3127_v50 }
  0x5a   : > { %2544 = vmatprep.mubr.msk.f32.mxu1 %vm2851_vm0, %v2850_v5 }
  0x5b   : > { %2441 = vmatmul.mubr.msk.f32.gmra.mrb[34].mxu0 %vm294_vm2, %v3254_v6  ;;  %2837 = vset.pattern.permute.xlu1 %v2853_v11 }
  0x5c   : > { %2443 = vmatprep.mubr.msk.f32.mxu0 %vm2851_vm0, %v2850_v5  ;;  %1355 = vperm.xlu1 %2837, %v2944_v19  }
  0x5d   : > { %786 = vperm.xlu0 %2835, %v3276_v10   ;;  %2545 = vmatmul.mubr.msk.f32.gmra.mrb[36].mxu1 %vm822_vm1, %v3143_v52 }
  0x5e   : > { %2547 = vmatprep.mubr.msk.f32.mxu1 %vm2851_vm0, %v2850_v5 }
  0x5f   : > { %2444 = vmatmul.mubr.msk.f32.gmra.mrb[36].mxu0 %vm294_vm2, %v3273_v9 }
  0x60   : > { %2446 = vmatprep.mubr.msk.f32.mxu0 %vm2851_vm0, %v2850_v5  ;;  %1363 = vperm.xlu1 %2837, %v2975_v26  }
  0x61   : > { %2838 = vset.pattern.permute.xlu0 %v2853_v11  ;;  %2548 = vmatmul.mubr.msk.f32.gmra.mrb[38].mxu1 %vm822_vm1, %v3146_v53  ;;  %v3417_v11 = vld [vmem:[%s2932_s17 + $0xe8] sm:$0xff] }
  0x62   : > { %2550 = vmatprep.mubr.msk.f32.mxu1 %vm2851_vm0, %v2850_v5  ;;  %1359 = vperm.xlu0 %2838, %v2957_v22   ;;  %4131 = vst [vmem:[#allocation6_spill] sm:$0xff] %v3417_v11 }
  0x63   : > { %2447 = vmatmul.mubr.msk.f32.gmra.mrb[38].mxu0 %vm294_vm2, %v3288_v12 }
  0x64   : > { %2449 = vmatprep.mubr.msk.f32.mxu0 %vm2851_vm0, %v2850_v5  ;;  %1367 = vperm.xlu1 %2837, %v2991_v28  }
  0x65   : > { %2551 = vmatmul.mubr.msk.f32.gmra.mrb[40].mxu1 %vm822_vm1, %v3162_v55 }
  0x66   : > { %2553 = vmatprep.mubr.msk.f32.mxu1 %vm2851_vm0, %v2850_v5  ;;  %1371 = vperm.xlu0 %2838, %v3007_v30  }
  0x67   : > { %2450 = vmatmul.mubr.msk.f32.gmra.mrb[40].mxu0 %vm294_vm2, %v3300_v13 }
  0x68   : > { %2452 = vmatprep.mubr.msk.f32.mxu0 %vm2851_vm0, %v2850_v5  ;;  %1375 = vperm.xlu1 %2837, %v3013_v32  }
  0x69   : > { %2554 = vmatmul.mubr.msk.f32.gmra.mrb[42].mxu1 %vm822_vm1, %v3165_v56 }
  0x6a   : > { %2556 = vmatprep.mubr.msk.f32.mxu1 %vm2851_vm0, %v2850_v5  ;;  %1379 = vperm.xlu0 %2838, %v3029_v34  }
  0x6b   : > { %2453 = vmatmul.mubr.msk.f32.gmra.mrb[42].mxu0 %vm294_vm2, %v3313_v14 }
  0x6c   : > { %2455 = vmatprep.mubr.msk.f32.mxu0 %vm2851_vm0, %v2850_v5  ;;  %1383 = vperm.xlu1 %2837, %v3032_v35  }
  0x6d   : > { %2557 = vmatmul.mubr.msk.f32.gmra.mrb[44].mxu1 %vm822_vm1, %v3181_v58 }
  0x6e   : > { %2559 = vmatprep.mubr.msk.f32.mxu1 %vm2851_vm0, %v2850_v5  ;;  %1387 = vperm.xlu0 %2838, %v3048_v37  }
  0x6f   : > { %2456 = vmatmul.mubr.msk.f32.gmra.mrb[44].mxu0 %vm294_vm2, %v3326_v15 }
  0x70   : > { %2458 = vmatprep.mubr.msk.f32.mxu0 %vm2851_vm0, %v2850_v5  ;;  %1391 = vperm.xlu1 %2837, %v3051_v38  }
  0x71   : > { %2560 = vmatmul.mubr.msk.f32.gmra.mrb[46].mxu1 %vm822_vm1, %v3184_v59 }
  0x72   : > { %2562 = vmatprep.mubr.msk.f32.mxu1 %vm2851_vm0, %v2850_v5  ;;  %1395 = vperm.xlu0 %2838, %v3067_v40  }
  0x73   : > { %2459 = vmatmul.mubr.msk.f32.gmra.mrb[46].mxu0 %vm294_vm2, %v3339_v16 }
  0x74   : > { %2461 = vmatprep.mubr.msk.f32.mxu0 %vm2851_vm0, %v2850_v5  ;;  %1399 = vperm.xlu1 %2837, %v3070_v41  }
  0x75   : > { %2563 = vmatmul.mubr.msk.f32.gmra.mrb[48].mxu1 %vm822_vm1, %v3200_v61 }
  0x76   : > { %2565 = vmatprep.mubr.msk.f32.mxu1 %vm2851_vm0, %v2850_v5  ;;  %1403 = vperm.xlu0 %2838, %v3086_v43  }
  0x77   : > { %2462 = vmatmul.mubr.msk.f32.gmra.mrb[48].mxu0 %vm294_vm2, %v3352_v17 }
  0x78   : > { %2464 = vmatprep.mubr.msk.f32.mxu0 %vm2851_vm0, %v2850_v5  ;;  %1407 = vperm.xlu1 %2837, %v3089_v44  }
  0x79   : > { %2566 = vmatmul.mubr.msk.f32.gmra.mrb[50].mxu1 %vm822_vm1, %v3203_v62 }
  0x7a   : > { %2568 = vmatprep.mubr.msk.f32.mxu1 %vm2851_vm0, %v2850_v5  ;;  %1411 = vperm.xlu0 %2838, %v3105_v46  }
  0x7b   : > { %2465 = vmatmul.mubr.msk.f32.gmra.mrb[50].mxu0 %vm294_vm2, %v3365_v18 }
  0x7c   : > { %2467 = vmatprep.mubr.msk.f32.mxu0 %vm2851_vm0, %v2850_v5  ;;  %1415 = vperm.xlu1 %2837, %v3108_v47  }
  0x7d   : > { %2569 = vmatmul.mubr.msk.f32.gmra.mrb[52].mxu1 %vm822_vm1, %v3219_v0 }
  0x7e   : > { %2571 = vmatprep.mubr.msk.f32.mxu1 %vm2851_vm0, %v2850_v5  ;;  %1419 = vperm.xlu0 %2838, %v3124_v49  }
  0x7f   : > { %2468 = vmatmul.mubr.msk.f32.gmra.mrb[52].mxu0 %vm294_vm2, %v3378_v21 }
  0x80   : > { %2470 = vmatprep.mubr.msk.f32.mxu0 %vm2851_vm0, %v2850_v5  ;;  %1423 = vperm.xlu1 %2837, %v3127_v50  }
  0x81   : > { %2572 = vmatmul.mubr.msk.f32.gmra.mrb[54].mxu1 %vm822_vm1, %v3222_v1 }
  0x82   : > { %2574 = vmatprep.mubr.msk.f32.mxu1 %vm2851_vm0, %v2850_v5  ;;  %1427 = vperm.xlu0 %2838, %v3143_v52  }
  0x83   : > { %2471 = vmatmul.mubr.msk.f32.gmra.mrb[54].mxu0 %vm294_vm2, %v3391_v24 }
  0x84   : > { %2473 = vmatprep.mubr.msk.f32.mxu0 %vm2851_vm0, %v2850_v5  ;;  %1431 = vperm.xlu1 %2837, %v3146_v53  }
  0x85   : > { %2575 = vmatmul.mubr.msk.f32.gmra.mrb[56].mxu1 %vm822_vm1, %v3238_v3 }
  0x86   : > { %2577 = vmatprep.mubr.msk.f32.mxu1 %vm2851_vm0, %v2850_v5  ;;  %1435 = vperm.xlu0 %2838, %v3162_v55  }
  0x87   : > { %2474 = vmatmul.mubr.msk.f32.gmra.mrb[56].mxu0 %vm294_vm2, %v3404_v25  ;;  %v3430_v25 = vld [vmem:[%s2932_s17 + $0xf0] sm:$0xff] }
  0x88   : > { %2476 = vmatprep.mubr.msk.f32.mxu0 %vm2851_vm0, %v2850_v5  ;;  %4132 = vst [vmem:[#allocation7_spill] sm:$0xff] %v3430_v25  ;;  %1439 = vperm.xlu1 %2837, %v3165_v56  }
  0x89   : > { %2578 = vmatmul.mubr.msk.f32.gmra.mrb[58].mxu1 %vm822_vm1, %v3241_v4 }
  0x8a   : > { %2580 = vmatprep.mubr.msk.f32.mxu1 %vm2851_vm0, %v2850_v5  ;;  %1443 = vperm.xlu0 %2838, %v3181_v58  }
  0x8b   : > { %2477 = vmatmul.mubr.msk.f32.gmra.mrb[58].mxu0 %vm294_vm2, %v3417_v11  ;;  %v3443_v11 = vld [vmem:[%s2932_s17 + $0xf8] sm:$0xff] }
  0x8c   : > { %2479 = vmatprep.mubr.msk.f32.mxu0 %vm2851_vm0, %v2850_v5  ;;  %4133 = vst [vmem:[#allocation8_spill] sm:$0xff] %v3443_v11  ;;  %1447 = vperm.xlu1 %2837, %v3184_v59  }
  0x8d   : > { %2581 = vmatmul.mubr.msk.f32.gmra.mrb[60].mxu1 %vm822_vm1, %v3257_v7 }
  0x8e   : > { %2583 = vmatprep.mubr.msk.f32.mxu1 %vm2851_vm0, %v2850_v5  ;;  %1451 = vperm.xlu0 %2838, %v3200_v61  }
  0x8f   : > { %2480 = vmatmul.mubr.msk.f32.gmra.mrb[60].mxu0 %vm294_vm2, %v3430_v25  ;;  %v3456_v25 = vld [vmem:[%s2932_s17 + $0x100] sm:$0xff] }
  0x90   : > { %2482 = vmatprep.mubr.msk.f32.mxu0 %vm2851_vm0, %v2850_v5  ;;  %4134 = vst [vmem:[#allocation9_spill] sm:$0xff] %v3456_v25  ;;  %1455 = vperm.xlu1 %2837, %v3203_v62  }
  0x91   : > { %2584 = vmatmul.mubr.msk.f32.gmra.mrb[62].mxu1 %vm822_vm1, %v3260_v8 }
  0x92   : > { %2586 = vmatprep.mubr.msk.f32.mxu1 %vm2851_vm0, %v2850_v5  ;;  %1459 = vperm.xlu0 %2838, %v3219_v0  }
  0x93   : > { %2483 = vmatmul.mubr.msk.f32.gmra.mrb[62].mxu0 %vm294_vm2, %v3443_v11 }
  0x94   : > { %2485 = vmatprep.mubr.msk.f32.mxu0 %vm2851_vm0, %v2850_v5  ;;  %1463 = vperm.xlu1 %2837, %v3222_v1  }
  0x95   : > { %2587 = vmatmul.mubr.msk.f32.gmra.mrb[64].mxu1 %vm822_vm1, %v3276_v10 }
  0x96   : > { %2597 = vmatprep.mubr.msk.f32.mxu1 %vm2851_vm0, %v2850_v5  ;;  %1467 = vperm.xlu0 %2838, %v3238_v3  }
  0x97   : > { %2486 = vmatmul.mubr.msk.f32.gmra.mrb[64].mxu0 %vm294_vm2, %v3456_v25 }
  0x98   : > { %2704 = vmatprep.mubr.msk.f32.mxu0 %vm2851_vm0, %v2850_v5  ;;  %1471 = vperm.xlu1 %2837, %v3241_v4  }
  0x99   : > { %2598 = vmatmul.mubr.msk.f32.vlgmr.msra.gmra.mrb[66].mxu1 %vm294_vm2, %v2947_v20 }
  0x9a   : > { %2600 = vmatprep.mubr.msk.f32.mxu1 %vm2851_vm0, %v2850_v5  ;;  %v3479_v25 = vpop.permute.xlu1 %636  ;;  %1475 = vperm.xlu0 %2838, %v3257_v7  }
  0x9b   : > { %2705 = vmatmul.mubr.msk.f32.vlgmr.msra.gmra.mrb[66].mxu0 %vm294_vm2, %v2947_v20 }
  0x9c   : > { %2707 = vmatprep.mubr.msk.f32.mxu0 %vm2851_vm0, %v2850_v5  ;;  %v3481_v11 = vpop.permute.xlu0 %626  ;;  %1479 = vperm.xlu1 %2837, %v3260_v8  }
  0x9d   : > { %2601 = vmatmul.mubr.msk.f32.gmra.mrb[68].mxu1 %vm294_vm2, %v2960_v23 }
  0x9e   : > { %2603 = vmatprep.mubr.msk.f32.mxu1 %vm2851_vm0, %v2850_v5  ;;  %v3493_v20 = vpop.permute.xlu1 %641  ;;  %1483 = vperm.xlu0 %2838, %v3276_v10  }
  0x9f   : > { %2708 = vmatmul.mubr.msk.f32.gmra.mrb[68].mxu0 %vm294_vm2, %v2960_v23  ;;  %v2854_v23 = vmov 3  }
  0xa0   : > { %2710 = vmatprep.mubr.msk.f32.mxu0 %vm2851_vm0, %v2850_v5  ;;  %v3495_v24 = vpop.permute.xlu0 %631  ;;  %2839 = vset.pattern.permute.xlu1 %v2854_v23 }
  0xa1   : > { %2604 = vmatmul.mubr.msk.f32.gmra.mrb[70].mxu1 %vm294_vm2, %v2978_v27  ;;  %1788 = vperm.xlu1 %2839, %v2944_v19  }
  0xa2   : > { %2606 = vmatprep.mubr.msk.f32.mxu1 %vm2851_vm0, %v2850_v5  ;;  %v3506_v21 = vpop.permute.xlu1 %651  ;;  %2840 = vset.pattern.permute.xlu0 %v2854_v23 }
  0xa3   : > { %2711 = vmatmul.mubr.msk.f32.gmra.mrb[70].mxu0 %vm294_vm2, %v2978_v27  ;;  %1792 = vperm.xlu0 %2840, %v2957_v22  }
  0xa4   : > { %2713 = vmatprep.mubr.msk.f32.mxu0 %vm2851_vm0, %v2850_v5  ;;  %v3508_v18 = vpop.permute.xlu0 %646 }
  0xa5   : > { %2607 = vmatmul.mubr.msk.f32.gmra.mrb[72].mxu1 %vm294_vm2, %v2994_v29  ;;  %1796 = vperm.xlu1 %2839, %v2975_v26  }
  0xa6   : > { %2609 = vmatprep.mubr.msk.f32.mxu1 %vm2851_vm0, %v2850_v5  ;;  %v3520_v27 = vpop.permute.xlu1 %661 }
  0xa7   : > { %2714 = vmatmul.mubr.msk.f32.gmra.mrb[72].mxu0 %vm294_vm2, %v2994_v29  ;;  %1804 = vperm.xlu0 %2840, %v3007_v30  }
  0xa8   : > { %2716 = vmatprep.mubr.msk.f32.mxu0 %vm2851_vm0, %v2850_v5  ;;  %v3522_v23 = vpop.permute.xlu0 %656 }
  0xa9   : > { %2610 = vmatmul.mubr.msk.f32.gmra.mrb[74].mxu1 %vm294_vm2, %v3010_v31  ;;  %1800 = vperm.xlu1 %2839, %v2991_v28  }
  0xaa   : > { %2612 = vmatprep.mubr.msk.f32.mxu1 %vm2851_vm0, %v2850_v5  ;;  %v3534_v19 = vpop.permute.xlu1 %671 }
  0xab   : > { %2717 = vmatmul.mubr.msk.f32.gmra.mrb[74].mxu0 %vm294_vm2, %v3010_v31  ;;  %1812 = vperm.xlu0 %2840, %v3029_v34  }
  0xac   : > { %2719 = vmatprep.mubr.msk.f32.mxu0 %vm2851_vm0, %v2850_v5  ;;  %v3536_v22 = vpop.permute.xlu0 %666 }
  0xad   : > { %2613 = vmatmul.mubr.msk.f32.gmra.mrb[76].mxu1 %vm294_vm2, %v3026_v33  ;;  %1808 = vperm.xlu1 %2839, %v3013_v32  }
  0xae   : > { %2615 = vmatprep.mubr.msk.f32.mxu1 %vm2851_vm0, %v2850_v5  ;;  %v3548_v26 = vpop.permute.xlu1 %681 }
  0xaf   : > { %2720 = vmatmul.mubr.msk.f32.gmra.mrb[76].mxu0 %vm294_vm2, %v3026_v33  ;;  %1820 = vperm.xlu0 %2840, %v3048_v37  }
  0xb0   : > { %2722 = vmatprep.mubr.msk.f32.mxu0 %vm2851_vm0, %v2850_v5  ;;  %v3550_v29 = vpop.permute.xlu0 %676 }
  0xb1   : > { %2616 = vmatmul.mubr.msk.f32.gmra.mrb[78].mxu1 %vm294_vm2, %v3045_v36  ;;  %1816 = vperm.xlu1 %2839, %v3032_v35  }
  0xb2   : > { %2618 = vmatprep.mubr.msk.f32.mxu1 %vm2851_vm0, %v2850_v5  ;;  %v3562_v28 = vpop.permute.xlu1 %691 }
  0xb3   : > { %2723 = vmatmul.mubr.msk.f32.gmra.mrb[78].mxu0 %vm294_vm2, %v3045_v36  ;;  %1828 = vperm.xlu0 %2840, %v3067_v40  }
  0xb4   : > { %2725 = vmatprep.mubr.msk.f32.mxu0 %vm2851_vm0, %v2850_v5  ;;  %v3564_v30 = vpop.permute.xlu0 %686 }
  0xb5   : > { %2619 = vmatmul.mubr.msk.f32.gmra.mrb[80].mxu1 %vm294_vm2, %v3064_v39  ;;  %1824 = vperm.xlu1 %2839, %v3051_v38  }
  0xb6   : > { %2621 = vmatprep.mubr.msk.f32.mxu1 %vm2851_vm0, %v2850_v5  ;;  %v3576_v31 = vpop.permute.xlu1 %701 }
  0xb7   : > { %2726 = vmatmul.mubr.msk.f32.gmra.mrb[80].mxu0 %vm294_vm2, %v3064_v39  ;;  %1836 = vperm.xlu0 %2840, %v3086_v43  }
  0xb8   : > { %2728 = vmatprep.mubr.msk.f32.mxu0 %vm2851_vm0, %v2850_v5  ;;  %v3578_v32 = vpop.permute.xlu0 %696 }
  0xb9   : > { %2622 = vmatmul.mubr.msk.f32.gmra.mrb[82].mxu1 %vm294_vm2, %v3083_v42  ;;  %1832 = vperm.xlu1 %2839, %v3070_v41  }
  0xba   : > { %2624 = vmatprep.mubr.msk.f32.mxu1 %vm2851_vm0, %v2850_v5  ;;  %v3590_v33 = vpop.permute.xlu1 %711 }
  0xbb   : > { %2729 = vmatmul.mubr.msk.f32.gmra.mrb[82].mxu0 %vm294_vm2, %v3083_v42  ;;  %1844 = vperm.xlu0 %2840, %v3105_v46  }
  0xbc   : > { %2731 = vmatprep.mubr.msk.f32.mxu0 %vm2851_vm0, %v2850_v5  ;;  %v3592_v34 = vpop.permute.xlu0 %706 }
  0xbd   : > { %2625 = vmatmul.mubr.msk.f32.gmra.mrb[84].mxu1 %vm294_vm2, %v3102_v45  ;;  %1840 = vperm.xlu1 %2839, %v3089_v44  }
  0xbe   : > { %2627 = vmatprep.mubr.msk.f32.mxu1 %vm2851_vm0, %v2850_v5  ;;  %v3604_v35 = vpop.permute.xlu1 %721 }
  0xbf   : > { %2732 = vmatmul.mubr.msk.f32.gmra.mrb[84].mxu0 %vm294_vm2, %v3102_v45  ;;  %1852 = vperm.xlu0 %2840, %v3124_v49  }
  0xc0   : > { %2734 = vmatprep.mubr.msk.f32.mxu0 %vm2851_vm0, %v2850_v5  ;;  %v3612_v36 = vpop.permute.xlu0 %716 }
  0xc1   : > { %2628 = vmatmul.mubr.msk.f32.gmra.mrb[86].mxu1 %vm294_vm2, %v3121_v48  ;;  %1848 = vperm.xlu1 %2839, %v3108_v47  }
  0xc2   : > { %2630 = vmatprep.mubr.msk.f32.mxu1 %vm2851_vm0, %v2850_v5  ;;  %v3618_v37 = vpop.permute.xlu1 %731 }
  0xc3   : > { %2735 = vmatmul.mubr.msk.f32.gmra.mrb[86].mxu0 %vm294_vm2, %v3121_v48  ;;  %1860 = vperm.xlu0 %2840, %v3143_v52  }
  0xc4   : > { %2737 = vmatprep.mubr.msk.f32.mxu0 %vm2851_vm0, %v2850_v5  ;;  %v3630_v38 = vpop.permute.xlu0 %726 }
  0xc5   : > { %2631 = vmatmul.mubr.msk.f32.gmra.mrb[88].mxu1 %vm294_vm2, %v3140_v51  ;;  %1856 = vperm.xlu1 %2839, %v3127_v50  }
  0xc6   : > { %2633 = vmatprep.mubr.msk.f32.mxu1 %vm2851_vm0, %v2850_v5  ;;  %v3632_v39 = vpop.permute.xlu1 %741 }
  0xc7   : > { %2738 = vmatmul.mubr.msk.f32.gmra.mrb[88].mxu0 %vm294_vm2, %v3140_v51  ;;  %1868 = vperm.xlu0 %2840, %v3162_v55  }
  0xc8   : > { %2740 = vmatprep.mubr.msk.f32.mxu0 %vm2851_vm0, %v2850_v5  ;;  %v3652_v41 = vpop.permute.xlu0 %736 }
  0xc9   : > { %2634 = vmatmul.mubr.msk.f32.gmra.mrb[90].mxu1 %vm294_vm2, %v3159_v54  ;;  %1864 = vperm.xlu1 %2839, %v3146_v53  }
  0xca   : > { %2636 = vmatprep.mubr.msk.f32.mxu1 %vm2851_vm0, %v2850_v5  ;;  %v3644_v40 = vpop.permute.xlu1 %751 }
  0xcb   : > { %2741 = vmatmul.mubr.msk.f32.gmra.mrb[90].mxu0 %vm294_vm2, %v3159_v54  ;;  %1876 = vperm.xlu0 %2840, %v3181_v58  }
  0xcc   : > { %2743 = vmatprep.mubr.msk.f32.mxu0 %vm2851_vm0, %v2850_v5  ;;  %v3670_v43 = vpop.permute.xlu0 %746 }
  0xcd   : > { %2637 = vmatmul.mubr.msk.f32.gmra.mrb[92].mxu1 %vm294_vm2, %v3178_v57  ;;  %1872 = vperm.xlu1 %2839, %v3165_v56  }
  0xce   : > { %2639 = vmatprep.mubr.msk.f32.mxu1 %vm2851_vm0, %v2850_v5  ;;  %v3658_v42 = vpop.permute.xlu1 %761 }
  0xcf   : > { %2744 = vmatmul.mubr.msk.f32.gmra.mrb[92].mxu0 %vm294_vm2, %v3178_v57  ;;  %1884 = vperm.xlu0 %2840, %v3200_v61  }
  0xd0   : > { %2746 = vmatprep.mubr.msk.f32.mxu0 %vm2851_vm0, %v2850_v5  ;;  %v3690_v45 = vpop.permute.xlu0 %756 }
  0xd1   : > { %2640 = vmatmul.mubr.msk.f32.gmra.mrb[94].mxu1 %vm294_vm2, %v3197_v60  ;;  %1880 = vperm.xlu1 %2839, %v3184_v59  }
  0xd2   : > { %2642 = vmatprep.mubr.msk.f32.mxu1 %vm2851_vm0, %v2850_v5  ;;  %v3678_v44 = vpop.permute.xlu1 %771 }
  0xd3   : > { %2747 = vmatmul.mubr.msk.f32.gmra.mrb[94].mxu0 %vm294_vm2, %v3197_v60  ;;  %1892 = vperm.xlu0 %2840, %v3219_v0  }
  0xd4   : > { %2749 = vmatprep.mubr.msk.f32.mxu0 %vm2851_vm0, %v2850_v5  ;;  %v3708_v47 = vpop.permute.xlu0 %766 }
  0xd5   : > { %2643 = vmatmul.mubr.msk.f32.gmra.mrb[96].mxu1 %vm294_vm2, %v3216_v63  ;;  %1888 = vperm.xlu1 %2839, %v3203_v62  }
  0xd6   : > { %2645 = vmatprep.mubr.msk.f32.mxu1 %vm2851_vm0, %v2850_v5  ;;  %v3696_v46 = vpop.permute.xlu1 %781 }
  0xd7   : > { %2750 = vmatmul.mubr.msk.f32.gmra.mrb[96].mxu0 %vm294_vm2, %v3216_v63  ;;  %1900 = vperm.xlu0 %2840, %v3238_v3  }
  0xd8   : > { %2752 = vmatprep.mubr.msk.f32.mxu0 %vm2851_vm0, %v2850_v5  ;;  %v3727_v49 = vpop.permute.xlu0 %776 }
  0xd9   : > { %2646 = vmatmul.mubr.msk.f32.gmra.mrb[98].mxu1 %vm294_vm2, %v3235_v2  ;;  %1896 = vperm.xlu1 %2839, %v3222_v1  }
  0xda   : > { %2648 = vmatprep.mubr.msk.f32.mxu1 %vm2851_vm0, %v2850_v5 }
  0xdb   : > { %2753 = vmatmul.mubr.msk.f32.gmra.mrb[98].mxu0 %vm294_vm2, %v3235_v2  ;;  %1908 = vperm.xlu0 %2840, %v3257_v7   ;;  %v3716_v48 = vpop.permute.xlu1 %1355 }
  0xdc   : > { %2755 = vmatprep.mubr.msk.f32.mxu0 %vm2851_vm0, %v2850_v5  ;;  %v3746_v57 = vpop.permute.xlu0 %786 }
  0xdd   : > { %2649 = vmatmul.mubr.msk.f32.gmra.mrb[100].mxu1 %vm294_vm2, %v3254_v6  ;;  %1904 = vperm.xlu1 %2839, %v3241_v4  }
  0xde   : > { %2651 = vmatprep.mubr.msk.f32.mxu1 %vm2851_vm0, %v2850_v5 }
  0xdf   : > { %2756 = vmatmul.mubr.msk.f32.gmra.mrb[100].mxu0 %vm294_vm2, %v3254_v6  ;;  %1916 = vperm.xlu0 %2840, %v3276_v10   ;;  %v3733_v50 = vpop.permute.xlu1 %1363 }
  0xe0   : > { %2758 = vmatprep.mubr.msk.f32.mxu0 %vm2851_vm0, %v2850_v5 }
  0xe1   : > { %2652 = vmatmul.mubr.msk.f32.gmra.mrb[102].mxu1 %vm294_vm2, %v3273_v9  ;;  %1912 = vperm.xlu1 %2839, %v3260_v8   ;;  %v3761_v1 = vpop.permute.xlu0 %1359 }
  0xe2   : > { %2654 = vmatprep.mubr.msk.f32.mxu1 %vm2851_vm0, %v2850_v5 }
  0xe3   : > { %2759 = vmatmul.mubr.msk.f32.gmra.mrb[102].mxu0 %vm294_vm2, %v3273_v9  ;;  %v3759_v0 = vpop.permute.xlu1 %1367 }
  0xe4   : > { %2761 = vmatprep.mubr.msk.f32.mxu0 %vm2851_vm0, %v2850_v5 }
  0xe5   : > { %2655 = vmatmul.mubr.msk.f32.gmra.mrb[104].mxu1 %vm294_vm2, %v3288_v12 }
  0xe6   : > { %2657 = vmatprep.mubr.msk.f32.mxu1 %vm2851_vm0, %v2850_v5 }
  0xe7   : > { %2762 = vmatmul.mubr.msk.f32.gmra.mrb[104].mxu0 %vm294_vm2, %v3288_v12 }
  0xe8   : > { %2764 = vmatprep.mubr.msk.f32.mxu0 %vm2851_vm0, %v2850_v5  ;;  %v955_v51 = vpop.f32.mrb[0].mxu1 }
  0xe9   : > { %v2492_v54 = vpop.f32.mrb[1].mxu1  ;;  %2658 = vmatmul.mubr.msk.f32.gmra.mrb[106].mxu1 %vm294_vm2, %v3300_v13 }
  0xea   : > { %v460_v52 = vpop.f32.mrb[0].mxu0  ;;  %2660 = vmatprep.mubr.msk.f32.mxu1 %vm2851_vm0, %v2850_v5 }
  0xeb   : > { %v789_v53 = vmul.f32 %v3481_v11, %v460_v52  ;;  %v2391_v55 = vpop.f32.mrb[1].mxu0  ;;  %2765 = vmatmul.mubr.msk.f32.gmra.mrb[106].mxu0 %vm294_vm2, %v3300_v13 }
  0xec   : > { %2767 = vmatprep.mubr.msk.f32.mxu0 %vm2851_vm0, %v2850_v5  ;;  %v960_v58 = vpop.f32.mrb[2].mxu1 }
  0xed   : > { %v3744_v56 = vadd.f32 %v955_v51, %v789_v53  ;;  %v2495_v61 = vpop.f32.mrb[3].mxu1  ;;  %2661 = vmatmul.mubr.msk.f32.gmra.mrb[108].mxu1 %vm294_vm2, %v3313_v14 }
  0xee   : > { %v465_v59 = vpop.f32.mrb[2].mxu0  ;;  %2663 = vmatprep.mubr.msk.f32.mxu1 %vm2851_vm0, %v2850_v5 }
  0xef   : > { %v790_v60 = vmul.f32 %v3495_v24, %v465_v59  ;;  %v2394_v62 = vpop.f32.mrb[3].mxu0  ;;  %2768 = vmatmul.mubr.msk.f32.gmra.mrb[108].mxu0 %vm294_vm2, %v3313_v14  ;;  %v3785_v24 = vpop.permute.xlu1 %1375  ;;  %v4135_v59 = vld [vmem:[#allocation2_spill] sm:$0xff] }
  0xf0   : > { %2770 = vmatprep.mubr.msk.f32.mxu0 %vm2851_vm0, %v2850_v5  ;;  %v965_v2 = vpop.f32.mrb[4].mxu1 }
  0xf1   : > { %v3757_v63 = vadd.f32 %v960_v58, %v790_v60  ;;  %v2498_v6 = vpop.f32.mrb[5].mxu1  ;;  %2664 = vmatmul.mubr.msk.f32.gmra.mrb[110].mxu1 %vm294_vm2, %v3326_v15 }
  0xf2   : > { %v470_v3 = vpop.f32.mrb[4].mxu0  ;;  %2666 = vmatprep.mubr.msk.f32.mxu1 %vm2851_vm0, %v2850_v5  ;;  %v4136_v6 = vld [vmem:[#allocation3_spill] sm:$0xff] }
  0xf3   : > { %v791_v4 = vmul.f32 %v3479_v25, %v470_v3  ;;  %v2397_v7 = vpop.f32.mrb[5].mxu0  ;;  %2771 = vmatmul.mubr.msk.f32.gmra.mrb[110].mxu0 %vm294_vm2, %v3326_v15  ;;  %v3787_v25 = vpop.permute.xlu0 %1371 }
  0xf4   : > { %2773 = vmatprep.mubr.msk.f32.mxu0 %vm2851_vm0, %v2850_v5  ;;  %v970_v9 = vpop.f32.mrb[6].mxu1  ;;  %v3811_v61 = vpop.permute.xlu1 %1383 }
  0xf5   : > { %v3772_v8 = vadd.f32 %v965_v2, %v791_v4  ;;  %v2501_v13 = vpop.f32.mrb[7].mxu1  ;;  %2667 = vmatmul.mubr.msk.f32.gmra.mrb[112].mxu1 %vm294_vm2, %v3339_v16 }
  0xf6   : > { %v475_v10 = vpop.f32.mrb[6].mxu0  ;;  %2669 = vmatprep.mubr.msk.f32.mxu1 %vm2851_vm0, %v2850_v5 }
  0xf7   : > { %v792_v12 = vmul.f32 %v3493_v20, %v475_v10  ;;  %v2400_v14 = vpop.f32.mrb[7].mxu0  ;;  %2774 = vmatmul.mubr.msk.f32.gmra.mrb[112].mxu0 %vm294_vm2, %v3339_v16  ;;  %v3813_v62 = vpop.permute.xlu0 %1379 }
  0xf8   : > { %2776 = vmatprep.mubr.msk.f32.mxu0 %vm2851_vm0, %v2850_v5  ;;  %v975_v11 = vpop.f32.mrb[8].mxu1  ;;  %v4137_v14 = vld [vmem:[#allocation4_spill] sm:$0xff] }
  0xf9   : > { %v3783_v15 = vadd.f32 %v970_v9, %v792_v12  ;;  %v2504_v52 = vpop.f32.mrb[9].mxu1  ;;  %2670 = vmatmul.mubr.msk.f32.gmra.mrb[114].mxu1 %vm294_vm2, %v3352_v17 }
  0xfa   : > { %v480_v20 = vpop.f32.mrb[8].mxu0  ;;  %2672 = vmatprep.mubr.msk.f32.mxu1 %vm2851_vm0, %v2850_v5 }
  0xfb   : > { %v793_v51 = vmul.f32 %v3508_v18, %v480_v20  ;;  %v2403_v16 = vpop.f32.mrb[9].mxu0  ;;  %2777 = vmatmul.mubr.msk.f32.gmra.mrb[114].mxu0 %vm294_vm2, %v3352_v17  ;;  %v3839_v52 = vpop.permute.xlu0 %1387 }
  0xfc   : > { %2779 = vmatprep.mubr.msk.f32.mxu0 %vm2851_vm0, %v2850_v5  ;;  %v980_v54 = vpop.f32.mrb[10].mxu1 }
  0xfd   : > { %v3798_v53 = vadd.f32 %v975_v11, %v793_v51  ;;  %v2507_v58 = vpop.f32.mrb[11].mxu1  ;;  %2673 = vmatmul.mubr.msk.f32.gmra.mrb[116].mxu1 %vm294_vm2, %v4135_v59  ;;  %v3837_v51 = vpop.permute.xlu1 %1391 }
  0xfe   : > { %v485_v55 = vpop.f32.mrb[10].mxu0  ;;  %2675 = vmatprep.mubr.msk.f32.mxu1 %vm2851_vm0, %v2850_v5 }
  0xff   : > { %v794_v18 = vmul.f32 %v3506_v21, %v485_v55  ;;  %v2406_v60 = vpop.f32.mrb[11].mxu0  ;;  %2780 = vmatmul.mubr.msk.f32.gmra.mrb[116].mxu0 %vm294_vm2, %v4135_v59 }
 0x100   : > { %2782 = vmatprep.mubr.msk.f32.mxu0 %vm2851_vm0, %v2850_v5  ;;  %v985_v21 = vpop.f32.mrb[12].mxu1 }
 0x101   : > { %v3809_v17 = vadd.f32 %v980_v54, %v794_v18  ;;  %v2510_v4 = vpop.f32.mrb[13].mxu1  ;;  %2676 = vmatmul.mubr.msk.f32.gmra.mrb[118].mxu1 %vm294_vm2, %v4136_v6  ;;  %v4138_v18 = vld [vmem:[#allocation5_spill] sm:$0xff] }
 0x102   : > { %v490_v2 = vpop.f32.mrb[12].mxu0  ;;  %2678 = vmatprep.mubr.msk.f32.mxu1 %vm2851_vm0, %v2850_v5 }
 0x103   : > { %v795_v3 = vmul.f32 %v3522_v23, %v490_v2  ;;  %v2409_v7 = vpop.f32.mrb[13].mxu0  ;;  %2783 = vmatmul.mubr.msk.f32.gmra.mrb[118].mxu0 %vm294_vm2, %v4136_v6 }
 0x104   : > { %2785 = vmatprep.mubr.msk.f32.mxu0 %vm2851_vm0, %v2850_v5  ;;  %v990_v10 = vpop.f32.mrb[14].mxu1  ;;  %v3863_v7 = vpop.permute.xlu1 %1399 }
 0x105   : > { %v3824_v9 = vadd.f32 %v985_v21, %v795_v3  ;;  %v2513_v13 = vpop.f32.mrb[15].mxu1  ;;  %2679 = vmatmul.mubr.msk.f32.gmra.mrb[120].mxu1 %vm294_vm2, %v4137_v14  ;;  %v4139_v3 = vld [vmem:[#allocation6_spill] sm:$0xff] }
 0x106   : > { %v495_v12 = vpop.f32.mrb[14].mxu0  ;;  %2681 = vmatprep.mubr.msk.f32.mxu1 %vm2851_vm0, %v2850_v5 }
 0x107   : > { %v796_v23 = vmul.f32 %v3520_v27, %v495_v12  ;;  %v2412_v11 = vpop.f32.mrb[15].mxu0  ;;  %2786 = vmatmul.mubr.msk.f32.gmra.mrb[120].mxu0 %vm294_vm2, %v4137_v14  ;;  %v4140_v14 = vld [vmem:[#allocation7_spill] sm:$0xff] }
 0x108   : > { %2788 = vmatprep.mubr.msk.f32.mxu0 %vm2851_vm0, %v2850_v5  ;;  %v995_v27 = vpop.f32.mrb[16].mxu1 }
 0x109   : > { %v3835_v20 = vadd.f32 %v990_v10, %v796_v23  ;;  %v2516_v55 = vpop.f32.mrb[17].mxu1  ;;  %2682 = vmatmul.mubr.msk.f32.gmra.mrb[122].mxu1 %vm294_vm2, %v4138_v18  ;;  %v3865_v10 = vpop.permute.xlu0 %1395 }
 0x10a   : > { %v500_v16 = vpop.f32.mrb[16].mxu0  ;;  %2684 = vmatprep.mubr.msk.f32.mxu1 %vm2851_vm0, %v2850_v5 }
 0x10b   : > { %v797_v54 = vmul.f32 %v3536_v22, %v500_v16  ;;  %v2415_v58 = vpop.f32.mrb[17].mxu0  ;;  %2789 = vmatmul.mubr.msk.f32.gmra.mrb[122].mxu0 %vm294_vm2, %v4138_v18  ;;  %v4141_v18 = vld [vmem:[#allocation8_spill] sm:$0xff] }
 0x10c   : > { %2791 = vmatprep.mubr.msk.f32.mxu0 %vm2851_vm0, %v2850_v5  ;;  %v1000_v60 = vpop.f32.mrb[18].mxu1 }
 0x10d   : > { %v3850_v59 = vadd.f32 %v995_v27, %v797_v54  ;;  %v2519_v2 = vpop.f32.mrb[19].mxu1  ;;  %2685 = vmatmul.mubr.msk.f32.gmra.mrb[124].mxu1 %vm294_vm2, %v4139_v3 }
 0x10e   : > { %v505_v21 = vpop.f32.mrb[18].mxu0  ;;  %2687 = vmatprep.mubr.msk.f32.mxu1 %vm2851_vm0, %v2850_v5 }
 0x10f   : > { %v798_v22 = vmul.f32 %v3534_v19, %v505_v21  ;;  %v2418_v4 = vpop.f32.mrb[19].mxu0  ;;  %2792 = vmatmul.mubr.msk.f32.gmra.mrb[124].mxu0 %vm294_vm2, %v4139_v3  ;;  %v3889_v21 = vpop.permute.xlu1 %1407 }
 0x110   : > { %2794 = vmatprep.mubr.msk.f32.mxu0 %vm2851_vm0, %v2850_v5  ;;  %v1005_v19 = vpop.f32.mrb[20].mxu1 }
 0x111   : > { %v3861_v6 = vadd.f32 %v1000_v60, %v798_v22  ;;  %v2522_v13 = vpop.f32.mrb[21].mxu1  ;;  %2688 = vmatmul.mubr.msk.f32.gmra.mrb[126].mxu1 %vm294_vm2, %v4140_v14  ;;  %v3891_v22 = vpop.permute.xlu0 %1403 }
 0x112   : > { %v510_v12 = vpop.f32.mrb[20].mxu0  ;;  %2690 = vmatprep.mubr.msk.f32.mxu1 %vm2851_vm0, %v2850_v5 }
 0x113   : > { %v799_v23 = vmul.f32 %v3550_v29, %v510_v12  ;;  %v2421_v11 = vpop.f32.mrb[21].mxu0  ;;  %2795 = vmatmul.mubr.msk.f32.gmra.mrb[126].mxu0 %vm294_vm2, %v4140_v14 }
 0x114   : > { %2797 = vmatprep.mubr.msk.f32.mxu0 %vm2851_vm0, %v2850_v5  ;;  %v1010_v16 = vpop.f32.mrb[22].mxu1 }
 0x115   : > { %v3876_v27 = vadd.f32 %v1005_v19, %v799_v23  ;;  %v2525_v55 = vpop.f32.mrb[23].mxu1  ;;  %2691 = vmatmul.mubr.msk.f32.gmra.mrb[128].mxu1 %vm294_vm2, %v4141_v18  ;;  %v4142_v19 = vld [vmem:[#allocation9_spill] sm:$0xff] }
 0x116   : > { %v515_v54 = vpop.f32.mrb[22].mxu0  ;;  %2693 = vmatprep.mubr.msk.f32.mxu1 %vm2851_vm0, %v2850_v5 }
 0x117   : > { %v800_v29 = vmul.f32 %v3548_v26, %v515_v54  ;;  %v2424_v58 = vpop.f32.mrb[23].mxu0  ;;  %2798 = vmatmul.mubr.msk.f32.gmra.mrb[128].mxu0 %vm294_vm2, %v4141_v18 }
 0x118   : > { %2800 = vmatprep.mubr.msk.f32.mxu0 %vm2851_vm0, %v2850_v5  ;;  %v1015_v26 = vpop.f32.mrb[24].mxu1 }
 0x119   : > { %v3887_v60 = vadd.f32 %v1010_v16, %v800_v29  ;;  %v2528_v4 = vpop.f32.mrb[25].mxu1  ;;  %2694 = vmatmul.mubr.msk.f32.gmra.mrb[130].mxu1 %vm294_vm2, %v4142_v19  ;;  %v3903_v29 = vpop.permute.xlu1 %1415 }
 0x11a   : > { %v520_v2 = vpop.f32.mrb[24].mxu0  ;;  %4143 = vst [vmem:[#allocation2_spill] sm:$0xff] %v3903_v29 }
 0x11b   : > { %v801_v3 = vmul.f32 %v3564_v30, %v520_v2  ;;  %v2427_v12 = vpop.f32.mrb[25].mxu0  ;;  %2801 = vmatmul.mubr.msk.f32.gmra.mrb[130].mxu0 %vm294_vm2, %v4142_v19  ;;  %v3905_v30 = vpop.permute.xlu0 %1411 }
 0x11c   : > { %v1020_v5 = vpop.f32.mrb[26].mxu1 }
 0x11d   : > { %v3898_v23 = vadd.f32 %v1015_v26, %v801_v3  ;;  %v2531_v11 = vpop.f32.mrb[27].mxu1 }
 0x11e   : > { %v525_v13 = vpop.f32.mrb[26].mxu0 }
 0x11f   : > { %v802_v14 = vmul.f32 %v3562_v28, %v525_v13  ;;  %v2430_v16 = vpop.f32.mrb[27].mxu0  ;;  %v3915_v11 = vpop.permute.xlu0 %1419 }
 0x120   : > { %v1025_v55 = vpop.f32.mrb[28].mxu1  ;;  %4145 = vst [vmem:[#allocation4_spill] sm:$0xff] %v3915_v11 }
 0x121   : > { %v3901_v54 = vadd.f32 %v1020_v5, %v802_v14  ;;  %v2534_v2 = vpop.f32.mrb[29].mxu1  ;;  %v3913_v14 = vpop.permute.xlu1 %1423 }
 0x122   : > { %v530_v18 = vpop.f32.mrb[28].mxu0  ;;  %4144 = vst [vmem:[#allocation3_spill] sm:$0xff] %v3913_v14 }
 0x123   : > { %v803_v58 = vmul.f32 %v3578_v32, %v530_v18  ;;  %v2433_v4 = vpop.f32.mrb[29].mxu0 }
 0x124   : > { %v1030_v3 = vpop.f32.mrb[30].mxu1 }
 0x125   : > { %v3908_v26 = vadd.f32 %v1025_v55, %v803_v58  ;;  %v2537_v12 = vpop.f32.mrb[31].mxu1 }
 0x126   : > { %v535_v19 = vpop.f32.mrb[30].mxu0 }
 0x127   : > { %v804_v28 = vmul.f32 %v3576_v31, %v535_v19  ;;  %v2436_v13 = vpop.f32.mrb[31].mxu0 }
 0x128   : > { %v1035_v16 = vpop.f32.mrb[32].mxu1  ;;  %v3925_v13 = vpop.permute.xlu0 %1427 }
 0x129   : > { %v3911_v5 = vadd.f32 %v1030_v3, %v804_v28  ;;  %v2540_v18 = vpop.f32.mrb[33].mxu1  ;;  %v3923_v28 = vpop.permute.xlu1 %1431  ;;  %4147 = vst [vmem:[#allocation6_spill] sm:$0xff] %v3925_v13 }
 0x12a   : > { %v540_v29 = vpop.f32.mrb[32].mxu0  ;;  %4146 = vst [vmem:[#allocation5_spill] sm:$0xff] %v3923_v28 }
 0x12b   : > { %v805_v32 = vmul.f32 %v3592_v34, %v540_v29  ;;  %v2439_v2 = vpop.f32.mrb[33].mxu0 }
 0x12c   : > { %v1040_v58 = vpop.f32.mrb[34].mxu1 }
 0x12d   : > { %v3918_v55 = vadd.f32 %v1035_v16, %v805_v32  ;;  %v2543_v19 = vpop.f32.mrb[35].mxu1 }
 0x12e   : > { %v545_v4 = vpop.f32.mrb[34].mxu0 }
 0x12f   : > { %v806_v31 = vmul.f32 %v3590_v33, %v545_v4  ;;  %v2442_v12 = vpop.f32.mrb[35].mxu0 }
 0x130   : > { %v1045_v14 = vpop.f32.mrb[36].mxu1  ;;  %v3935_v12 = vpop.permute.xlu0 %1435 }
 0x131   : > { %v3921_v3 = vadd.f32 %v1040_v58, %v806_v31  ;;  %v2546_v29 = vpop.f32.mrb[37].mxu1  ;;  %v3933_v31 = vpop.permute.xlu1 %1439  ;;  %4149 = vst [vmem:[#allocation8_spill] sm:$0xff] %v3935_v12 }
 0x132   : > { %v550_v11 = vpop.f32.mrb[36].mxu0  ;;  %4148 = vst [vmem:[#allocation7_spill] sm:$0xff] %v3933_v31 }
 0x133   : > { %v807_v34 = vmul.f32 %v3612_v36, %v550_v11  ;;  %v2445_v18 = vpop.f32.mrb[37].mxu0 }
 0x134   : > { %v1050_v32 = vpop.f32.mrb[38].mxu1 }
 0x135   : > { %v3928_v16 = vadd.f32 %v1045_v14, %v807_v34  ;;  %v2549_v4 = vpop.f32.mrb[39].mxu1 }
 0x136   : > { %v555_v2 = vpop.f32.mrb[38].mxu0 }
 0x137   : > { %v808_v33 = vmul.f32 %v3604_v35, %v555_v2  ;;  %v2448_v19 = vpop.f32.mrb[39].mxu0 }
 0x138   : > { %v1055_v28 = vpop.f32.mrb[40].mxu1  ;;  %v3945_v19 = vpop.permute.xlu0 %1443 }
 0x139   : > { %v3931_v58 = vadd.f32 %v1050_v32, %v808_v33  ;;  %v2552_v11 = vpop.f32.mrb[41].mxu1  ;;  %v3943_v33 = vpop.permute.xlu1 %1447  ;;  %4151 = vst [vmem:[#allocation10_spill] sm:$0xff] %v3945_v19 }
 0x13a   : > { %v560_v13 = vpop.f32.mrb[40].mxu0  ;;  %4150 = vst [vmem:[#allocation9_spill] sm:$0xff] %v3943_v33 }
 0x13b   : > { %v809_v36 = vmul.f32 %v3630_v38, %v560_v13  ;;  %v2451_v29 = vpop.f32.mrb[41].mxu0 }
 0x13c   : > { %v1060_v34 = vpop.f32.mrb[42].mxu1 }
 0x13d   : > { %v3938_v14 = vadd.f32 %v1055_v28, %v809_v36  ;;  %v2555_v2 = vpop.f32.mrb[43].mxu1 }
 0x13e   : > { %v565_v18 = vpop.f32.mrb[42].mxu0 }
 0x13f   : > { %v810_v35 = vmul.f32 %v3618_v37, %v565_v18  ;;  %v2454_v4 = vpop.f32.mrb[43].mxu0 }
 0x140   : > { %v1065_v31 = vpop.f32.mrb[44].mxu1  ;;  %v3955_v4 = vpop.permute.xlu0 %1451 }
 0x141   : > { %v3941_v32 = vadd.f32 %v1060_v34, %v810_v35  ;;  %v2558_v13 = vpop.f32.mrb[45].mxu1  ;;  %v3953_v35 = vpop.permute.xlu1 %1455  ;;  %4153 = vst [vmem:[#allocation12_spill] sm:$0xff] %v3955_v4 }
 0x142   : > { %v570_v12 = vpop.f32.mrb[44].mxu0  ;;  %4152 = vst [vmem:[#allocation11_spill] sm:$0xff] %v3953_v35 }
 0x143   : > { %v811_v38 = vmul.f32 %v3652_v41, %v570_v12  ;;  %v2457_v11 = vpop.f32.mrb[45].mxu0 }
 0x144   : > { %v1070_v36 = vpop.f32.mrb[46].mxu1 }
 0x145   : > { %v3948_v28 = vadd.f32 %v1065_v31, %v811_v38  ;;  %v2561_v18 = vpop.f32.mrb[47].mxu1 }
 0x146   : > { %v575_v29 = vpop.f32.mrb[46].mxu0 }
 0x147   : > { %v812_v37 = vmul.f32 %v3632_v39, %v575_v29  ;;  %v2460_v2 = vpop.f32.mrb[47].mxu0 }
 0x148   : > { %v1075_v33 = vpop.f32.mrb[48].mxu1  ;;  %v3965_v2 = vpop.permute.xlu0 %1459 }
 0x149   : > { %v3951_v34 = vadd.f32 %v1070_v36, %v812_v37  ;;  %v2564_v12 = vpop.f32.mrb[49].mxu1  ;;  %v3963_v37 = vpop.permute.xlu1 %1463  ;;  %4155 = vst [vmem:[#allocation14_spill] sm:$0xff] %v3965_v2 }
 0x14a   : > { %v580_v19 = vpop.f32.mrb[48].mxu0  ;;  %4154 = vst [vmem:[#allocation13_spill] sm:$0xff] %v3963_v37 }
 0x14b   : > { %v813_v41 = vmul.f32 %v3670_v43, %v580_v19  ;;  %v2463_v13 = vpop.f32.mrb[49].mxu0 }
 0x14c   : > { %v1080_v38 = vpop.f32.mrb[50].mxu1 }
 0x14d   : > { %v3958_v31 = vadd.f32 %v1075_v33, %v813_v41  ;;  %v2567_v29 = vpop.f32.mrb[51].mxu1 }
 0x14e   : > { %v585_v11 = vpop.f32.mrb[50].mxu0 }
 0x14f   : > { %v814_v39 = vmul.f32 %v3644_v40, %v585_v11  ;;  %v2466_v18 = vpop.f32.mrb[51].mxu0 }
 0x150   : > { %v1085_v35 = vpop.f32.mrb[52].mxu1  ;;  %v3975_v18 = vpop.permute.xlu0 %1467 }
 0x151   : > { %v3961_v36 = vadd.f32 %v1080_v38, %v814_v39  ;;  %v2570_v19 = vpop.f32.mrb[53].mxu1  ;;  %v3973_v39 = vpop.permute.xlu1 %1471  ;;  %4157 = vst [vmem:[#allocation16_spill] sm:$0xff] %v3975_v18 }
 0x152   : > { %v590_v4 = vpop.f32.mrb[52].mxu0  ;;  %4156 = vst [vmem:[#allocation15_spill] sm:$0xff] %v3973_v39 }
 0x153   : > { %v815_v43 = vmul.f32 %v3690_v45, %v590_v4  ;;  %v2469_v12 = vpop.f32.mrb[53].mxu0 }
 0x154   : > { %v1090_v41 = vpop.f32.mrb[54].mxu1 }
 0x155   : > { %v3968_v33 = vadd.f32 %v1085_v35, %v815_v43  ;;  %v2573_v11 = vpop.f32.mrb[55].mxu1 }
 0x156   : > { %v595_v13 = vpop.f32.mrb[54].mxu0 }
 0x157   : > { %v816_v40 = vmul.f32 %v3658_v42, %v595_v13  ;;  %v2472_v29 = vpop.f32.mrb[55].mxu0 }
 0x158   : > { %v1095_v37 = vpop.f32.mrb[56].mxu1  ;;  %v3985_v29 = vpop.permute.xlu0 %1475 }
 0x159   : > { %v3971_v38 = vadd.f32 %v1090_v41, %v816_v40  ;;  %v2576_v4 = vpop.f32.mrb[57].mxu1  ;;  %v3983_v40 = vpop.permute.xlu1 %1479  ;;  %4159 = vst [vmem:[#allocation18_spill] sm:$0xff] %v3985_v29 }
 0x15a   : > { %v600_v2 = vpop.f32.mrb[56].mxu0  ;;  %4158 = vst [vmem:[#allocation17_spill] sm:$0xff] %v3983_v40 }
 0x15b   : > { %v817_v45 = vmul.f32 %v3708_v47, %v600_v2  ;;  %v2475_v19 = vpop.f32.mrb[57].mxu0 }
 0x15c   : > { %v1100_v43 = vpop.f32.mrb[58].mxu1 }
 0x15d   : > { %v3978_v35 = vadd.f32 %v1095_v37, %v817_v45  ;;  %v2579_v13 = vpop.f32.mrb[59].mxu1 }
 0x15e   : > { %v605_v12 = vpop.f32.mrb[58].mxu0 }
 0x15f   : > { %v818_v42 = vmul.f32 %v3678_v44, %v605_v12  ;;  %v2478_v11 = vpop.f32.mrb[59].mxu0 }
 0x160   : > { %v1105_v39 = vpop.f32.mrb[60].mxu1  ;;  %v3993_v11 = vpop.permute.xlu0 %1483 }
 0x161   : > { %v3981_v41 = vadd.f32 %v1100_v43, %v818_v42  ;;  %v2582_v2 = vpop.f32.mrb[61].mxu1  ;;  %v1789_v42 = vpop.permute.xlu1 %1788  ;;  %4160 = vst [vmem:[#allocation19_spill] sm:$0xff] %v3993_v11 }
 0x162   : > { %v610_v18 = vpop.f32.mrb[60].mxu0 }
 0x163   : > { %v819_v47 = vmul.f32 %v3727_v49, %v610_v18  ;;  %v2481_v4 = vpop.f32.mrb[61].mxu0 }
 0x164   : > { %v1110_v45 = vpop.f32.mrb[62].mxu1 }
 0x165   : > { %v3988_v37 = vadd.f32 %v1105_v39, %v819_v47  ;;  %v2585_v12 = vpop.f32.mrb[63].mxu1  ;;  %v1797_v11 = vpop.permute.xlu1 %1796 }
 0x166   : > { %v615_v19 = vpop.f32.mrb[62].mxu0 }
 0x167   : > { %v820_v44 = vmul.f32 %v3696_v46, %v615_v19  ;;  %v2484_v13 = vpop.f32.mrb[63].mxu0 }
 0x168   : > { %v1115_v40 = vpop.f32.mrb[64].mxu1 }
 0x169   : > { %v3991_v43 = vadd.f32 %v1110_v45, %v820_v44  ;;  %v2588_v18 = vpop.f32.mrb[65].mxu1  ;;  %v1793_v44 = vpop.permute.xlu0 %1792 }
 0x16a   : > { %v620_v29 = vpop.f32.mrb[64].mxu0 }
 0x16b   : > { %v821_v49 = vmul.f32 %v3746_v57, %v620_v29  ;;  %v2487_v2 = vpop.f32.mrb[65].mxu0 }
 0x16c   : > { %v1190_v47 = vpop.f32.mrb[66].mxu1 }
 0x16d   : > { %v3996_v39 = vadd.f32 %v1115_v40, %v821_v49  ;;  %v1486_v46 = vmul.f32 %v3716_v48, %v1190_v47  ;;  %v2599_v19 = vpop.f32.mrb[67].mxu1 }
 0x16e   : > { %v1623_v4 = vpop.f32.mrb[66].mxu0 }
 0x16f   : > { %4161 = vst [vmem:[#allocation20_spill] sm:$0xff] %v3996_v39  ;;  %v1919_v12 = vmul.f32 %v1789_v42, %v1623_v4  ;;  %v2706_v45 = vpop.f32.mrb[67].mxu0  ;;  %v1519_v13 = vadd.f32 %v1486_v46, %v3744_v56 }
 0x170   : > { %v1195_v57 = vpop.f32.mrb[68].mxu1 }
 0x171   : > { %v1952_v29 = vadd.f32 %v1919_v12, %v1519_v13  ;;  %v1487_v49 = vmul.f32 %v3761_v1, %v1195_v57  ;;  %v2602_v48 = vpop.f32.mrb[69].mxu1  ;;  %v1801_v13 = vpop.permute.xlu1 %1800 }
 0x172   : > { %v1628_v40 = vpop.f32.mrb[68].mxu0 }
 0x173   : > { %v1920_v18 = vmul.f32 %v1793_v44, %v1628_v40  ;;  %v2709_v42 = vpop.f32.mrb[69].mxu0  ;;  %1985 = vst [vmem:[%s4004_s28] sm:$0xff] %v1952_v29  ;;  %v1520_v2 = vadd.f32 %v1487_v49, %v3757_v63 }
 0x174   : > { %v1200_v56 = vpop.f32.mrb[70].mxu1 }
 0x175   : > { %v1953_v4 = vadd.f32 %v1920_v18, %v1520_v2  ;;  %v1488_v46 = vmul.f32 %v3733_v50, %v1200_v56  ;;  %v2605_v19 = vpop.f32.mrb[71].mxu1  ;;  %v1805_v50 = vpop.permute.xlu0 %1804 }
 0x176   : > { %v1633_v47 = vpop.f32.mrb[70].mxu0 }
 0x177   : > { %v1921_v45 = vmul.f32 %v1797_v11, %v1633_v47  ;;  %v2712_v39 = vpop.f32.mrb[71].mxu0  ;;  %1986 = vst [vmem:[%s4004_s28 + $0x8] sm:$0xff] %v1953_v4  ;;  %v1521_v12 = vadd.f32 %v1488_v46, %v3772_v8  ;;  %v1809_v47 = vpop.permute.xlu1 %1808 }
 0x178   : > { %v1205_v1 = vpop.f32.mrb[72].mxu1 }
 0x179   : > { %v1954_v44 = vadd.f32 %v1921_v45, %v1521_v12  ;;  %v1489_v40 = vmul.f32 %v3759_v0, %v1205_v1  ;;  %v2608_v63 = vpop.f32.mrb[73].mxu1  ;;  %v1813_v1 = vpop.permute.xlu0 %1812 }
 0x17a   : > { %v1638_v57 = vpop.f32.mrb[72].mxu0 }
 0x17b   : > { %v1922_v29 = vmul.f32 %v1801_v13, %v1638_v57  ;;  %v2715_v49 = vpop.f32.mrb[73].mxu0  ;;  %1987 = vst [vmem:[%s4004_s28 + $0x10] sm:$0xff] %v1954_v44  ;;  %v1522_v48 = vadd.f32 %v1489_v40, %v3783_v15 }
 0x17c   : > { %v1210_v18 = vpop.f32.mrb[74].mxu1 }
 0x17d   : > { %v1955_v39 = vadd.f32 %v1922_v29, %v1522_v48  ;;  %v1490_v8 = vmul.f32 %v3787_v25, %v1210_v18  ;;  %v2611_v42 = vpop.f32.mrb[75].mxu1  ;;  %v1817_v48 = vpop.permute.xlu1 %1816 }
 0x17e   : > { %v1643_v11 = vpop.f32.mrb[74].mxu0 }
 0x17f   : > { %v1923_v2 = vmul.f32 %v1805_v50, %v1643_v11  ;;  %v2718_v56 = vpop.f32.mrb[75].mxu0  ;;  %1988 = vst [vmem:[%s4004_s28 + $0x18] sm:$0xff] %v1955_v39  ;;  %v1523_v0 = vadd.f32 %v1490_v8, %v3798_v53 }
 0x180   : > { %v1215_v4 = vpop.f32.mrb[76].mxu1 }
 0x181   : > { %v1956_v19 = vadd.f32 %v1923_v2, %v1523_v0  ;;  %v1491_v15 = vmul.f32 %v3785_v24, %v1215_v4  ;;  %v2614_v45 = vpop.f32.mrb[77].mxu1  ;;  %v1821_v2 = vpop.permute.xlu0 %1820 }
 0x182   : > { %v1648_v46 = vpop.f32.mrb[76].mxu0 }
 0x183   : > { %v1924_v12 = vmul.f32 %v1809_v47, %v1648_v46  ;;  %v2721_v13 = vpop.f32.mrb[77].mxu0  ;;  %1989 = vst [vmem:[%s4004_s28 + $0x20] sm:$0xff] %v1956_v19  ;;  %v1524_v25 = vadd.f32 %v1491_v15, %v3809_v17  ;;  %v1825_v15 = vpop.permute.xlu1 %1824 }
 0x184   : > { %v1220_v57 = vpop.f32.mrb[78].mxu1 }
 0x185   : > { %v1957_v40 = vadd.f32 %v1924_v12, %v1524_v25  ;;  %v1492_v63 = vmul.f32 %v3813_v62, %v1220_v57  ;;  %v2617_v53 = vpop.f32.mrb[79].mxu1 }
 0x186   : > { %v1653_v44 = vpop.f32.mrb[78].mxu0 }
 0x187   : > { %v1925_v29 = vmul.f32 %v1813_v1, %v1653_v44  ;;  %v2724_v49 = vpop.f32.mrb[79].mxu0  ;;  %1990 = vst [vmem:[%s4004_s28 + $0x28] sm:$0xff] %v1957_v40  ;;  %v1525_v24 = vadd.f32 %v1492_v63, %v3824_v9  ;;  %v1829_v44 = vpop.permute.xlu0 %1828 }
 0x188   : > { %v1225_v50 = vpop.f32.mrb[80].mxu1 }
 0x189   : > { %v1958_v11 = vadd.f32 %v1925_v29, %v1525_v24  ;;  %v1493_v39 = vmul.f32 %v3811_v61, %v1225_v50  ;;  %v2620_v17 = vpop.f32.mrb[81].mxu1  ;;  %v1833_v24 = vpop.permute.xlu1 %1832 }
 0x18a   : > { %v1658_v18 = vpop.f32.mrb[80].mxu0 }
 0x18b   : > { %v1926_v8 = vmul.f32 %v1817_v48, %v1658_v18  ;;  %v2727_v42 = vpop.f32.mrb[81].mxu0  ;;  %1991 = vst [vmem:[%s4004_s28 + $0x30] sm:$0xff] %v1958_v11  ;;  %v1526_v62 = vadd.f32 %v1493_v39, %v3835_v20 }
 0x18c   : > { %v1230_v56 = vpop.f32.mrb[82].mxu1  ;;  %v1837_v42 = vpop.permute.xlu0 %1836 }
 0x18d   : > { %v1959_v0 = vadd.f32 %v1926_v8, %v1526_v62  ;;  %v1494_v4 = vmul.f32 %v3839_v52, %v1230_v56  ;;  %v2623_v9 = vpop.f32.mrb[83].mxu1 }
 0x18e   : > { %v1663_v47 = vpop.f32.mrb[82].mxu0  ;;  %v1841_v9 = vpop.permute.xlu1 %1840 }
 0x18f   : > { %v1927_v46 = vmul.f32 %v1821_v2, %v1663_v47  ;;  %v2730_v19 = vpop.f32.mrb[83].mxu0  ;;  %1992 = vst [vmem:[%s4004_s28 + $0x38] sm:$0xff] %v1959_v0  ;;  %v1527_v61 = vadd.f32 %v1494_v4, %v3850_v59 }
 0x190   : > { %v1235_v45 = vpop.f32.mrb[84].mxu1 }
 0x191   : > { %v1960_v13 = vadd.f32 %v1927_v46, %v1527_v61  ;;  %v1495_v1 = vmul.f32 %v3837_v51, %v1235_v45  ;;  %v2626_v20 = vpop.f32.mrb[85].mxu1 }
 0x192   : > { %v1668_v12 = vpop.f32.mrb[84].mxu0 }
 0x193   : > { %v1928_v25 = vmul.f32 %v1825_v15, %v1668_v12  ;;  %v2733_v57 = vpop.f32.mrb[85].mxu0  ;;  %1993 = vst [vmem:[%s4004_s28 + $0x40] sm:$0xff] %v1960_v13  ;;  %v1528_v52 = vadd.f32 %v1495_v1, %v3861_v6  ;;  %v1845_v13 = vpop.permute.xlu0 %1844 }
 0x194   : > { %v1240_v40 = vpop.f32.mrb[86].mxu1 }
 0x195   : > { %v1961_v53 = vadd.f32 %v1928_v25, %v1528_v52  ;;  %v1496_v29 = vmul.f32 %v3865_v10, %v1240_v40  ;;  %v2629_v59 = vpop.f32.mrb[87].mxu1  ;;  %v1849_v40 = vpop.permute.xlu1 %1848 }
 0x196   : > { %v1673_v63 = vpop.f32.mrb[86].mxu0  ;;  %v4162_v59 = vld [vmem:[#allocation2_spill] sm:$0xff] }
 0x197   : > { %v1929_v49 = vmul.f32 %v1829_v44, %v1673_v63  ;;  %v2736_v48 = vpop.f32.mrb[87].mxu0  ;;  %1994 = vst [vmem:[%s4004_s28 + $0x48] sm:$0xff] %v1961_v53  ;;  %v1529_v51 = vadd.f32 %v1496_v29, %v3876_v27 }
 0x198   : > { %v1245_v50 = vpop.f32.mrb[88].mxu1 }
 0x199   : > { %v1962_v11 = vadd.f32 %v1929_v49, %v1529_v51  ;;  %v1497_v39 = vmul.f32 %v3863_v7, %v1245_v50  ;;  %v2632_v6 = vpop.f32.mrb[89].mxu1  ;;  %v1853_v51 = vpop.permute.xlu0 %1852 }
 0x19a   : > { %v1678_v18 = vpop.f32.mrb[88].mxu0 }
 0x19b   : > { %v1930_v17 = vmul.f32 %v1833_v24, %v1678_v18  ;;  %v2739_v8 = vpop.f32.mrb[89].mxu0  ;;  %1995 = vst [vmem:[%s4004_s28 + $0x50] sm:$0xff] %v1962_v11  ;;  %v1530_v10 = vadd.f32 %v1497_v39, %v3887_v60  ;;  %v4163_v39 = vld [vmem:[#allocation4_spill] sm:$0xff] }
 0x19c   : > { %v1250_v2 = vpop.f32.mrb[90].mxu1 }
 0x19d   : > { %v1963_v56 = vadd.f32 %v1930_v17, %v1530_v10  ;;  %v1498_v47 = vmul.f32 %v3891_v22, %v1250_v2  ;;  %v2635_v27 = vpop.f32.mrb[91].mxu1 }
 0x19e   : > { %v1683_v62 = vpop.f32.mrb[90].mxu0 }
 0x19f   : > { %v1931_v0 = vmul.f32 %v1837_v42, %v1683_v62  ;;  %v2742_v4 = vpop.f32.mrb[91].mxu0  ;;  %1996 = vst [vmem:[%s4004_s28 + $0x58] sm:$0xff] %v1963_v56  ;;  %v1531_v7 = vadd.f32 %v1498_v47, %v3898_v23  ;;  %v1857_v42 = vpop.permute.xlu1 %1856  ;;  %v4164_v47 = vld [vmem:[#allocation3_spill] sm:$0xff] }
 0x1a0   : > { %v1255_v46 = vpop.f32.mrb[92].mxu1 }
 0x1a1   : > { %v1964_v15 = vadd.f32 %v1931_v0, %v1531_v7  ;;  %v1499_v61 = vmul.f32 %v3889_v21, %v1255_v46  ;;  %v2638_v60 = vpop.f32.mrb[93].mxu1 }
 0x1a2   : > { %v1688_v19 = vpop.f32.mrb[92].mxu0 }
 0x1a3   : > { %v1932_v45 = vmul.f32 %v1841_v9, %v1688_v19  ;;  %v2745_v12 = vpop.f32.mrb[93].mxu0  ;;  %1997 = vst [vmem:[%s4004_s28 + $0x60] sm:$0xff] %v1964_v15  ;;  %v1532_v22 = vadd.f32 %v1499_v61, %v3901_v54  ;;  %v1861_v9 = vpop.permute.xlu0 %1860  ;;  %v4165_v61 = vld [vmem:[#allocation6_spill] sm:$0xff] }
 0x1a4   : > { %v1260_v1 = vpop.f32.mrb[94].mxu1 }
 0x1a5   : > { %v1965_v25 = vadd.f32 %v1932_v45, %v1532_v22  ;;  %v1500_v57 = vmul.f32 %v3905_v30, %v1260_v1  ;;  %v2641_v23 = vpop.f32.mrb[95].mxu1 }
 0x1a6   : > { %v1693_v20 = vpop.f32.mrb[94].mxu0 }
 0x1a7   : > { %v1933_v44 = vmul.f32 %v1845_v13, %v1693_v20  ;;  %v2748_v52 = vpop.f32.mrb[95].mxu0  ;;  %1998 = vst [vmem:[%s4004_s28 + $0x68] sm:$0xff] %v1965_v25  ;;  %v1533_v21 = vadd.f32 %v1500_v57, %v3908_v26  ;;  %v1865_v13 = vpop.permute.xlu1 %1864  ;;  %v4166_v57 = vld [vmem:[#allocation5_spill] sm:$0xff] }
 0x1a8   : > { %v1265_v63 = vpop.f32.mrb[96].mxu1 }
 0x1a9   : > { %v1966_v29 = vadd.f32 %v1933_v44, %v1533_v21  ;;  %v1501_v49 = vmul.f32 %v4162_v59, %v1265_v63  ;;  %v2644_v54 = vpop.f32.mrb[97].mxu1  ;;  %v4167_v59 = vld [vmem:[#allocation8_spill] sm:$0xff] }
 0x1aa   : > { %v1698_v53 = vpop.f32.mrb[96].mxu0 }
 0x1ab   : > { %v1934_v48 = vmul.f32 %v1849_v40, %v1698_v53  ;;  %v2751_v24 = vpop.f32.mrb[97].mxu0  ;;  %1999 = vst [vmem:[%s4004_s28 + $0x70] sm:$0xff] %v1966_v29  ;;  %v1534_v30 = vadd.f32 %v1501_v49, %v3911_v5  ;;  %v1869_v40 = vpop.permute.xlu0 %1868 }
 0x1ac   : > { %v1270_v50 = vpop.f32.mrb[98].mxu1  ;;  %v1873_v24 = vpop.permute.xlu1 %1872 }
 0x1ad   : > { %v1967_v11 = vadd.f32 %v1934_v48, %v1534_v30  ;;  %v1502_v6 = vmul.f32 %v4163_v39, %v1270_v50  ;;  %v2647_v26 = vpop.f32.mrb[99].mxu1 }
 0x1ae   : > { %v1703_v18 = vpop.f32.mrb[98].mxu0 }
 0x1af   : > { %v1935_v17 = vmul.f32 %v1853_v51, %v1703_v18  ;;  %v2754_v8 = vpop.f32.mrb[99].mxu0  ;;  %2000 = vst [vmem:[%s4004_s28 + $0x78] sm:$0xff] %v1967_v11  ;;  %v1535_v10 = vadd.f32 %v1502_v6, %v3918_v55  ;;  %v4168_v11 = vld [vmem:[#allocation7_spill] sm:$0xff] }
 0x1b0   : > { %v1275_v2 = vpop.f32.mrb[100].mxu1 }
 0x1b1   : > { %v1968_v56 = vadd.f32 %v1935_v17, %v1535_v10  ;;  %v1503_v27 = vmul.f32 %v4164_v47, %v1275_v2  ;;  %v2650_v5 = vpop.f32.mrb[101].mxu1  ;;  %v1877_v17 = vpop.permute.xlu0 %1876 }
 0x1b2   : > { %v1708_v62 = vpop.f32.mrb[100].mxu0  ;;  %v1881_v5 = vpop.permute.xlu1 %1880 }
 0x1b3   : > { %v1936_v0 = vmul.f32 %v1857_v42, %v1708_v62  ;;  %v2757_v4 = vpop.f32.mrb[101].mxu0  ;;  %2001 = vst [vmem:[%s4004_s28 + $0x80] sm:$0xff] %v1968_v56  ;;  %v1536_v7 = vadd.f32 %v1503_v27, %v3921_v3  ;;  %v4169_v62 = vld [vmem:[#allocation10_spill] sm:$0xff] }
 0x1b4   : > { %v1280_v46 = vpop.f32.mrb[102].mxu1 }
 0x1b5   : > { %v1969_v15 = vadd.f32 %v1936_v0, %v1536_v7  ;;  %v1504_v60 = vmul.f32 %v4165_v61, %v1280_v46  ;;  %v2653_v55 = vpop.f32.mrb[103].mxu1  ;;  %v4170_v46 = vld [vmem:[#allocation9_spill] sm:$0xff] }
 0x1b6   : > { %v1713_v19 = vpop.f32.mrb[102].mxu0 }
 0x1b7   : > { %v1937_v45 = vmul.f32 %v1861_v9, %v1713_v19  ;;  %v2760_v12 = vpop.f32.mrb[103].mxu0  ;;  %2002 = vst [vmem:[%s4004_s28 + $0x88] sm:$0xff] %v1969_v15  ;;  %v1537_v22 = vadd.f32 %v1504_v60, %v3928_v16  ;;  %v1885_v60 = vpop.permute.xlu0 %1884 }
 0x1b8   : > { %v1285_v1 = vpop.f32.mrb[104].mxu1 }
 0x1b9   : > { %v1970_v25 = vadd.f32 %v1937_v45, %v1537_v22  ;;  %v1505_v23 = vmul.f32 %v4166_v57, %v1285_v1  ;;  %v2656_v3 = vpop.f32.mrb[105].mxu1  ;;  %v4171_v22 = vld [vmem:[#allocation12_spill] sm:$0xff]  ;;  %v1889_v57 = vpop.permute.xlu1 %1888 }
 0x1ba   : > { %v1718_v20 = vpop.f32.mrb[104].mxu0 }
 0x1bb   : > { %v1938_v44 = vmul.f32 %v1865_v13, %v1718_v20  ;;  %v2763_v52 = vpop.f32.mrb[105].mxu0  ;;  %2003 = vst [vmem:[%s4004_s28 + $0x90] sm:$0xff] %v1970_v25  ;;  %v1538_v21 = vadd.f32 %v1505_v23, %v3931_v58 }
 0x1bc   : > { %v1290_v63 = vpop.f32.mrb[106].mxu1 }
 0x1bd   : > { %v1971_v29 = vadd.f32 %v1938_v44, %v1538_v21  ;;  %v1506_v49 = vmul.f32 %v4167_v59, %v1290_v63  ;;  %v2659_v16 = vpop.f32.mrb[107].mxu1 }
 0x1be   : > { %v1723_v53 = vpop.f32.mrb[106].mxu0 }
 0x1bf   : > { %v1939_v54 = vmul.f32 %v1869_v40, %v1723_v53  ;;  %v2766_v48 = vpop.f32.mrb[107].mxu0  ;;  %2004 = vst [vmem:[%s4004_s28 + $0x98] sm:$0xff] %v1971_v29  ;;  %v1539_v51 = vadd.f32 %v1506_v49, %v3938_v14  ;;  %v4172_v40 = vld [vmem:[#allocation11_spill] sm:$0xff]  ;;  %v1893_v29 = vpop.permute.xlu0 %1892 }
 0x1c0   : > { %v1295_v30 = vpop.f32.mrb[108].mxu1  ;;  %v4173_v48 = vld [vmem:[#allocation14_spill] sm:$0xff] }
 0x1c1   : > { %v1972_v18 = vadd.f32 %v1939_v54, %v1539_v51  ;;  %v1507_v39 = vmul.f32 %v4168_v11, %v1295_v30  ;;  %v2662_v58 = vpop.f32.mrb[109].mxu1 }
 0x1c2   : > { %v1728_v50 = vpop.f32.mrb[108].mxu0 }
 0x1c3   : > { %v1940_v6 = vmul.f32 %v1873_v24, %v1728_v50  ;;  %v2769_v26 = vpop.f32.mrb[109].mxu0  ;;  %2005 = vst [vmem:[%s4004_s28 + $0xa0] sm:$0xff] %v1972_v18  ;;  %v1540_v8 = vadd.f32 %v1507_v39, %v3941_v32  ;;  %v1897_v50 = vpop.permute.xlu1 %1896 }
 0x1c4   : > { %v1300_v42 = vpop.f32.mrb[110].mxu1 }
 0x1c5   : > { %v1973_v2 = vadd.f32 %v1940_v6, %v1540_v8  ;;  %v1508_v56 = vmul.f32 %v4169_v62, %v1300_v42  ;;  %v2665_v14 = vpop.f32.mrb[111].mxu1  ;;  %v4174_v6 = vld [vmem:[#allocation13_spill] sm:$0xff]  ;;  %v1901_v42 = vpop.permute.xlu0 %1900 }
 0x1c6   : > { %v1733_v10 = vpop.f32.mrb[110].mxu0  ;;  %v4175_v14 = vld [vmem:[#allocation16_spill] sm:$0xff] }
 0x1c7   : > { %v1941_v47 = vmul.f32 %v1877_v17, %v1733_v10  ;;  %v2772_v27 = vpop.f32.mrb[111].mxu0  ;;  %2006 = vst [vmem:[%s4004_s28 + $0xa8] sm:$0xff] %v1973_v2  ;;  %v1541_v0 = vadd.f32 %v1508_v56, %v3948_v28 }
 0x1c8   : > { %v1305_v4 = vpop.f32.mrb[112].mxu1 }
 0x1c9   : > { %v1974_v7 = vadd.f32 %v1941_v47, %v1541_v0  ;;  %v1509_v19 = vmul.f32 %v4170_v46, %v1305_v4  ;;  %v2668_v32 = vpop.f32.mrb[113].mxu1  ;;  %v1905_v0 = vpop.permute.xlu1 %1904 }
 0x1ca   : > { %v1738_v9 = vpop.f32.mrb[112].mxu0 }
 0x1cb   : > { %v1942_v15 = vmul.f32 %v1881_v5, %v1738_v9  ;;  %v2775_v61 = vpop.f32.mrb[113].mxu0  ;;  %2007 = vst [vmem:[%s4004_s28 + $0xb0] sm:$0xff] %v1974_v7  ;;  %v1542_v55 = vadd.f32 %v1509_v19, %v3951_v34  ;;  %v4176_v19 = vld [vmem:[#allocation15_spill] sm:$0xff] }
 0x1cc   : > { %v1310_v45 = vpop.f32.mrb[114].mxu1 }
 0x1cd   : > { %v1975_v13 = vadd.f32 %v1942_v15, %v1542_v55  ;;  %v1510_v1 = vmul.f32 %v4171_v22, %v1310_v45  ;;  %v2671_v28 = vpop.f32.mrb[115].mxu1  ;;  %v4177_v22 = vld [vmem:[#allocation18_spill] sm:$0xff] }
 0x1ce   : > { %v1743_v12 = vpop.f32.mrb[114].mxu0 }
 0x1cf   : > { %v1943_v20 = vmul.f32 %v1885_v60, %v1743_v12  ;;  %v2778_v25 = vpop.f32.mrb[115].mxu0  ;;  %2008 = vst [vmem:[%s4004_s28 + $0xb8] sm:$0xff] %v1975_v13  ;;  %v1543_v23 = vadd.f32 %v1510_v1, %v3958_v31  ;;  %v1909_v60 = vpop.permute.xlu0 %1908 }
 0x1d0   : > { %v1315_v3 = vpop.f32.mrb[116].mxu1  ;;  %v1913_v25 = vpop.permute.xlu1 %1912 }
 0x1d1   : > { %v1976_v52 = vadd.f32 %v1943_v20, %v1543_v23  ;;  %v1511_v21 = vmul.f32 %v4172_v40, %v1315_v3  ;;  %v2674_v34 = vpop.f32.mrb[117].mxu1 }
 0x1d2   : > { %v1748_v44 = vpop.f32.mrb[116].mxu0 }
 0x1d3   : > { %v1944_v63 = vmul.f32 %v1889_v57, %v1748_v44  ;;  %v2781_v53 = vpop.f32.mrb[117].mxu0  ;;  %2009 = vst [vmem:[%s4004_s28 + $0xc0] sm:$0xff] %v1976_v52  ;;  %v1544_v59 = vadd.f32 %v1511_v21, %v3961_v36  ;;  %v4178_v52 = vld [vmem:[#allocation17_spill] sm:$0xff] }
 0x1d4   : > { %v1320_v49 = vpop.f32.mrb[118].mxu1 }
 0x1d5   : > { %v1977_v54 = vadd.f32 %v1944_v63, %v1544_v59  ;;  %v1512_v24 = vmul.f32 %v4173_v48, %v1320_v49  ;;  %v2677_v31 = vpop.f32.mrb[119].mxu1  ;;  %v1917_v63 = vpop.permute.xlu0 %1916 }
 0x1d6   : > { %v1753_v16 = vpop.f32.mrb[118].mxu0  ;;  %v4180_v31 = vld [vmem:[#allocation20_spill] sm:$0xff] }
 0x1d7   : > { %v1945_v51 = vmul.f32 %v1893_v29, %v1753_v16  ;;  %v2784_v30 = vpop.f32.mrb[119].mxu0  ;;  %2010 = vst [vmem:[%s4004_s28 + $0xc8] sm:$0xff] %v1977_v54  ;;  %v1545_v18 = vadd.f32 %v1512_v24, %v3968_v33  ;;  %v4179_v16 = vld [vmem:[#allocation19_spill] sm:$0xff] }
 0x1d8   : > { %v1325_v11 = vpop.f32.mrb[120].mxu1 }
 0x1d9   : > { %v1978_v58 = vadd.f32 %v1945_v51, %v1545_v18  ;;  %v1513_v26 = vmul.f32 %v4174_v6, %v1325_v11  ;;  %v2680_v36 = vpop.f32.mrb[121].mxu1 }
 0x1da   : > { %v1758_v39 = vpop.f32.mrb[120].mxu0 }
 0x1db   : > { %v1946_v17 = vmul.f32 %v1897_v50, %v1758_v39  ;;  %v2787_v8 = vpop.f32.mrb[121].mxu0  ;;  %2011 = vst [vmem:[%s4004_s28 + $0xd0] sm:$0xff] %v1978_v58  ;;  %v1546_v10 = vadd.f32 %v1513_v26, %v3971_v38 }
 0x1dc   : > { %v1330_v2 = vpop.f32.mrb[122].mxu1 }
 0x1dd   : > { %v1979_v56 = vadd.f32 %v1946_v17, %v1546_v10  ;;  %v1514_v47 = vmul.f32 %v4175_v14, %v1330_v2  ;;  %v2683_v33 = vpop.f32.mrb[123].mxu1 }
 0x1de   : > { %v1763_v62 = vpop.f32.mrb[122].mxu0 }
 0x1df   : > { %v1947_v27 = vmul.f32 %v1901_v42, %v1763_v62  ;;  %v2790_v5 = vpop.f32.mrb[123].mxu0  ;;  %2012 = vst [vmem:[%s4004_s28 + $0xd8] sm:$0xff] %v1979_v56  ;;  %v1547_v4 = vadd.f32 %v1514_v47, %v3978_v35 }
 0x1e0   : > { %v1335_v9 = vpop.f32.mrb[124].mxu1 }
 0x1e1   : > { %v1980_v46 = vadd.f32 %v1947_v27, %v1547_v4  ;;  %v1515_v32 = vmul.f32 %v4176_v19, %v1335_v9  ;;  %v2686_v38 = vpop.f32.mrb[125].mxu1 }
 0x1e2   : > { %v1768_v7 = vpop.f32.mrb[124].mxu0 }
 0x1e3   : > { %v1948_v15 = vmul.f32 %v1905_v0, %v1768_v7  ;;  %v2793_v61 = vpop.f32.mrb[125].mxu0  ;;  %2013 = vst [vmem:[%s4004_s28 + $0xe0] sm:$0xff] %v1980_v46  ;;  %v1548_v55 = vadd.f32 %v1515_v32, %v3981_v41 }
 0x1e4   : > { %v1340_v45 = vpop.f32.mrb[126].mxu1 }
 0x1e5   : > { %v1981_v13 = vadd.f32 %v1948_v15, %v1548_v55  ;;  %v1516_v1 = vmul.f32 %v4177_v22, %v1340_v45  ;;  %v2689_v35 = vpop.f32.mrb[127].mxu1 }
 0x1e6   : > { %v1773_v12 = vpop.f32.mrb[126].mxu0 }
 0x1e7   : > { %v1949_v28 = vmul.f32 %v1909_v60, %v1773_v12  ;;  %v2796_v20 = vpop.f32.mrb[127].mxu0  ;;  %2014 = vst [vmem:[%s4004_s28 + $0xe8] sm:$0xff] %v1981_v13  ;;  %v1549_v57 = vadd.f32 %v1516_v1, %v3988_v37 }
 0x1e8   : > { %v1345_v23 = vpop.f32.mrb[128].mxu1 }
 0x1e9   : > { %v1982_v44 = vadd.f32 %v1949_v28, %v1549_v57  ;;  %v1517_v40 = vmul.f32 %v4178_v52, %v1345_v23  ;;  %v2692_v41 = vpop.f32.mrb[129].mxu1 }
 0x1ea   : > { %v1778_v3 = vpop.f32.mrb[128].mxu0 }
 0x1eb   : > { %v1950_v21 = vmul.f32 %v1913_v25, %v1778_v3  ;;  %v2799_v34 = vpop.f32.mrb[129].mxu0  ;;  %2015 = vst [vmem:[%s4004_s28 + $0xf0] sm:$0xff] %v1982_v44  ;;  %v1550_v53 = vadd.f32 %v1517_v40, %v3991_v43 }
 0x1ec   : > { %v1350_v29 = vpop.f32.mrb[130].mxu1 }
 0x1ed   : > { %v1983_v49 = vadd.f32 %v1950_v21, %v1550_v53  ;;  %v1518_v54 = vmul.f32 %v4179_v16, %v1350_v29  ;;  %v2695_v37 = vpop.f32.mrb[131].mxu1 }
 0x1ee   : > { %v1783_v59 = vpop.f32.mrb[130].mxu0 }
 0x1ef   : > { %v1951_v48 = vmul.f32 %v1917_v63, %v1783_v59  ;;  %v2802_v24 = vpop.f32.mrb[131].mxu0  ;;  %2016 = vst [vmem:[%s4004_s28 + $0xf8] sm:$0xff] %v1983_v49  ;;  %v1551_v51 = vadd.f32 %v1518_v54, %v4180_v31 }
 0x1f1   : > { %v1984_v30 = vadd.f32 %v1951_v48, %v1551_v51 }
 0x1f3   : > { %2017 = vst [vmem:[%s4004_s28 + $0x100] sm:$0xff] %v1984_v30 }
 0x1f4 PF: > { %s14_s15 = sadd.s32 1, %s2847_s15  }
 0x1f5   : > { %p11_p4 = scmp.ge.s32.totalorder %s14_s15, 6  }
 0x1f7   :  { %13 = sbr.rel (!%p11_p4) target bundleno = 1 (0x1), region = 71 }

</bundles_post_ra>
